<compile_context>
chip_gen: v7x
topology: tpu7x:2x2x1
jax: 0.10.0
libtpu: 0.0.40
codegen_flags: <defaults>
</compile_context>

<pallas_src>
import functools

import jax
import jax.numpy as jnp
from jax import lax
from jax.experimental import pallas as pl
from jax.experimental.pallas import tpu as pltpu

# ----------------------------- model dimensions -----------------------------
CIN, COUT, KH, KW = 3, 18, 3, 3
H = W = 32
HP, WP = H // 2, W // 2            # 16, 16 (pooled spatial)
COUT_PAD = 24                      # conv channels padded to a multiple of 8
KDIM = KH * CIN * (W + 2)          # 306: folded conv-GEMM contraction dim
KPAD = 384                         # zero-padded to a lane-aligned K (3*128)
HALF = COUT_PAD * WP               # 384: one w-parity half of the GEMM N dim
NDIM = 2 * HALF                    # 768: GEMM N = (w-parity, cout_pad, pooled col)
FEAT = HP * COUT_PAD * WP          # 6144: flattened pooled features per image
FC_KT = 1536                       # fc1 K tile (4 pipelined steps)


# --------------------- kernel 1: conv + ReLU + maxpool ----------------------

def _conv_relu_pool_kernel(x_ref, t_ref, b_ref, o_ref, *, tb):
    """One GEMM + elementwise epilogue per batch block.

    x_ref : (2, tb, 16, KPAD)  rows = (row-parity r, image b, pooled-row ip)
    t_ref : (KPAD, NDIM)       Toeplitz-folded conv weight (loaded once)
    b_ref : (1, NDIM)          conv bias broadcast over (parity, channel, col)
    o_ref : (tb, 16, 384)      pooled activations, lanes = co*16 + t
    """
    m = 2 * tb * HP                                    # GEMM M = 32 * tb
    lhs = x_ref[...].reshape(m, KPAD)                  # leading-dim merge (free)

    # Entire 3x3 conv for the block as one K=384 GEMM (MXU, single pass).
    y = jnp.dot(lhs, t_ref[...], preferred_element_type=jnp.float32)
    y = jnp.maximum(y + b_ref[...], 0.0)               # bias + ReLU

    # 2x2/2 max-pool with statically aligned slices only:
    #  width pairs live in the two 384-lane halves of N,
    wpool = jnp.maximum(y[:, :HALF], y[:, HALF:])      # (m, 384)
    #  height pairs live in the two (tb*16)-row halves of M.
    hpool = jnp.maximum(wpool[: m // 2, :], wpool[m // 2:, :])   # (tb*16, 384)

    o_ref[...] = hpool.reshape(tb, HP, HALF)           # leading-dim split (free)


def _prep_conv_operands(conv_w, conv_b):
    """conv_w (Cout,Cin,kh,kw) -> Toeplitz-folded (KPAD, NDIM) + bias (1, NDIM)."""
    w24 = jnp.pad(conv_w, ((0, COUT_PAD - COUT), (0, 0), (0, 0), (0, 0)))
    w_perm = jnp.transpose(w24, (2, 1, 3, 0))          # (dh, c, dw, co)

    u = jnp.arange(W + 2)[:, None, None]               # padded input column
    p = jnp.arange(2)[None, :, None]                   # output-column parity
    t = jnp.arange(WP)[None, None, :]                  # pooled column
    dw = u - (2 * t + p)                               # kernel column offset
    valid = (dw >= 0) & (dw <= KW - 1)

    g = w_perm[:, :, jnp.clip(dw, 0, KW - 1), :]       # (dh, c, u, p, t, co)
    g = jnp.where(valid[None, None, :, :, :, None], g, 0.0)
    tmat = jnp.transpose(g, (0, 1, 2, 3, 5, 4)).reshape(KDIM, NDIM)
    tmat = jnp.pad(tmat, ((0, KPAD - KDIM), (0, 0)))   # zero-pad K to 384

    b24 = jnp.pad(conv_b, (0, COUT_PAD - COUT))
    bias = jnp.broadcast_to(b24[None, :, None], (2, COUT_PAD, WP)).reshape(1, NDIM)
    return tmat, bias


def _prep_input(x):
    """NCHW (B,3,32,32) -> (2, B, 16, KPAD): rows (r, b, ip), lanes (dh, c, u)."""
    b = x.shape[0]
    xpad = jnp.pad(x, ((0, 0), (0, 0), (1, 1), (1, 1)))                      # (B,3,34,34)
    rows = jnp.stack([xpad[:, :, dh:dh + H, :] for dh in range(KH)], axis=1)  # (B,dh,c,i,u)
    rows = jnp.transpose(rows, (3, 0, 1, 2, 4))                               # (i,B,dh,c,u)
    rows = rows.reshape(HP, 2, b, KH, CIN, W + 2)                             # (ip,r,B,dh,c,u)
    rows = jnp.transpose(rows, (1, 2, 0, 3, 4, 5)).reshape(2, b, HP, KDIM)
    return jnp.pad(rows, ((0, 0), (0, 0), (0, 0), (0, KPAD - KDIM)))


def conv_relu_pool(x, conv_w, conv_b):
    b = x.shape[0]
    tb = max(t for t in (8, 4, 2, 1) if b % t == 0)     # batch block per grid step
    xprep = _prep_input(x)
    tmat, bias = _prep_conv_operands(conv_w, conv_b)

    kern = functools.partial(_conv_relu_pool_kernel, tb=tb)
    return pl.pallas_call(
        kern,
        out_shape=jax.ShapeDtypeStruct((b, HP, HALF), jnp.float32),
        grid_spec=pltpu.PrefetchScalarGridSpec(
            num_scalar_prefetch=0,
            grid=(b // tb,),
            in_specs=[
                pl.BlockSpec((2, tb, HP, KPAD), lambda i: (0, i, 0, 0)),
                pl.BlockSpec((KPAD, NDIM), lambda i: (0, 0)),   # resident weight
                pl.BlockSpec((1, NDIM), lambda i: (0, 0)),      # resident bias
            ],
            out_specs=pl.BlockSpec((tb, HP, HALF), lambda i: (i, 0, 0)),
        ),
        compiler_params=pltpu.CompilerParams(
            dimension_semantics=("parallel",),          # both TCs on v7x megacore
            vmem_limit_bytes=32 * 1024 * 1024,          # actual use < 4 MiB/step
        ),
    )(xprep, tmat, bias)


# ------------------- kernel 2: fused fc1(+ReLU) + fc2 -----------------------

def _fc_head_kernel(x_ref, w1_ref, b1_ref, w2_ref, b2_ref, o_ref, acc_ref):
    """K-gridded fc1 accumulation; ReLU + fc2 epilogue at the last K step."""
    k = pl.program_id(0)

    @pl.when(k == 0)
    def _():
        acc_ref[...] = jnp.zeros_like(acc_ref)

    acc_ref[...] += jnp.dot(x_ref[...], w1_ref[...],
                            preferred_element_type=jnp.float32)

    @pl.when(k == pl.num_programs(0) - 1)
    def _():
        hid = jnp.maximum(acc_ref[...] + b1_ref[...], 0.0)
        o_ref[...] = (jnp.dot(hid, w2_ref[...], preferred_element_type=jnp.float32)
                      + b2_ref[...]).astype(o_ref.dtype)


def _prep_fc1(fc1_w):
    """Permute + zero-pad fc1_w rows to match kernel 1's pooled layout.

    (4608, 64) rows = co*256 + ip*16 + t  ->  (6144, 64) rows = ip*384 + co*16 + t
    """
    n_out = fc1_w.shape[-1]
    w = fc1_w.reshape(COUT, HP, WP, n_out)
    w = jnp.pad(w, ((0, COUT_PAD - COUT), (0, 0), (0, 0), (0, 0)))
    return jnp.transpose(w, (1, 0, 2, 3)).reshape(FEAT, n_out)


def fc_head(flat, w1p, b1, w2, b2):
    b = flat.shape[0]
    n_hid = w1p.shape[1]
    n_out = w2.shape[1]
    nk = FEAT // FC_KT
    return pl.pallas_call(
        _fc_head_kernel,
        out_shape=jax.ShapeDtypeStruct((b, n_out), jnp.float32),
        grid_spec=pltpu.PrefetchScalarGridSpec(
            num_scalar_prefetch=0,
            grid=(nk,),                                        # pipeline fc1_w stream
            in_specs=[
                pl.BlockSpec((b, FC_KT), lambda k: (0, k)),
                pl.BlockSpec((FC_KT, n_hid), lambda k: (k, 0)),
                pl.BlockSpec((1, n_hid), lambda k: (0, 0)),
                pl.BlockSpec((64, n_out), lambda k: (0, 0)),
                pl.BlockSpec((1, n_out), lambda k: (0, 0)),
            ],
            out_specs=pl.BlockSpec((b, n_out), lambda k: (0, 0)),
            scratch_shapes=[pltpu.VMEM((b, n_hid), jnp.float32)],
        ),
        compiler_params=pltpu.CompilerParams(
            dimension_semantics=("arbitrary",),
            vmem_limit_bytes=32 * 1024 * 1024,
        ),
    )(flat, w1p, b1, w2, b2)


# ------------------------------ model forward -------------------------------

def simple_cnn_forward(x, params):
    b = x.shape[0]
    pooled = conv_relu_pool(x, params["conv_w"], params["conv_b"])   # (B, 16, 384)
    flat = pooled.reshape(b, FEAT)                                   # contiguous, free
    w1p = _prep_fc1(params["fc1_w"])
    return fc_head(flat, w1p,
                   params["fc1_b"].reshape(1, -1),
                   params["fc2_w"],
                   params["fc2_b"].reshape(1, -1))                   # (B, 10)


# --------------------------- pure-JAX reference ------------------------------

def simple_cnn_reference(x, params):
    conv = lax.conv_general_dilated(
        x, params["conv_w"], window_strides=(1, 1), padding=((1, 1), (1, 1)),
        dimension_numbers=("NCHW", "OIHW", "NCHW"),
        precision=lax.Precision.HIGHEST)
    conv = jnp.maximum(conv + params["conv_b"][None, :, None, None], 0.0)
    pooled = lax.reduce_window(conv, -jnp.inf, lax.max,
                               (1, 1, 2, 2), (1, 1, 2, 2), "VALID")
    flat = pooled.reshape(x.shape[0], -1)
    hid = jnp.maximum(
        jnp.dot(flat, params["fc1_w"], precision=lax.Precision.HIGHEST)
        + params["fc1_b"], 0.0)
    return (jnp.dot(hid, params["fc2_w"], precision=lax.Precision.HIGHEST)
            + params["fc2_b"])


# ------------------------------- param init ---------------------------------

def init_params(key):
    """Deterministic PyTorch-default-style uniform init (synthetic weights)."""
    ks = jax.random.split(key, 6)

    def u(k, shape, fan_in):
        bound = 1.0 / jnp.sqrt(jnp.float32(fan_in))
        return jax.random.uniform(k, shape, jnp.float32, -bound, bound)

    return {
        "conv_w": u(ks[0], (COUT, CIN, KH, KW), CIN * KH * KW),
        "conv_b": u(ks[1], (COUT,), CIN * KH * KW),
        "fc1_w": u(ks[2], (COUT * HP * WP, 64), COUT * HP * WP),   # stored (in, out)
        "fc1_b": u(ks[3], (64,), COUT * HP * WP),
        "fc2_w": u(ks[4], (64, 10), 64),
        "fc2_b": u(ks[5], (10,), 64),
    }


if __name__ == "__main__":
    key = jax.random.PRNGKey(0)
    k_x, k_p = jax.random.split(key)
    # fc1 expects 18*16*16 features -> input spatial must be 32x32, Cin=3.
    x = jax.random.normal(k_x, (2, CIN, H, W), dtype=jnp.float32)
    params = init_params(k_p)

    fwd = jax.jit(simple_cnn_forward)
    out = fwd(x, params)
    jax.block_until_ready(out)
    assert out.shape == (2, 10) and out.dtype == jnp.float32

    ref = simple_cnn_reference(x, params)
    assert jnp.allclose(out, ref, atol=2e-3, rtol=2e-3), \
        f"max abs err {jnp.max(jnp.abs(out - ref))}"
    print("KERNEL_OK")
</pallas_src>

<mosaic_0001>
module attributes {stable_mosaic.version = 11 : i64} {
  func.func @_conv_relu_pool_kernel(%arg0: i32, %arg1: memref<2x2x16x384xf32, #tpu.memory_space<vmem>>, %arg2: memref<384x768xf32, #tpu.memory_space<vmem>>, %arg3: memref<1x768xf32, #tpu.memory_space<vmem>>, %arg4: memref<2x16x384xf32, #tpu.memory_space<vmem>>) attributes {dimension_semantics = [#tpu.dimension_semantics<parallel>], iteration_bounds = array<i64: 1>, scalar_prefetch = 0 : i64, scratch_operands = 0 : i64, tpu.core_type = #tpu.core_type<tc>, window_params = [{transform_indices = @transform_0, window_bounds = array<i64: 2, 2, 16, 384>}, {pipeline_mode = #tpu.pipeline_mode<synchronous>, transform_indices = @transform_1, window_bounds = array<i64: 384, 768>}, {pipeline_mode = #tpu.pipeline_mode<synchronous>, transform_indices = @transform_2, window_bounds = array<i64: 1, 768>}, {transform_indices = @transform_3, window_bounds = array<i64: 2, 16, 384>}]} {
    %c0 = arith.constant 0 : index
    %c0_0 = arith.constant 0 : index
    %c0_1 = arith.constant 0 : index
    %c0_2 = arith.constant 0 : index
    %0 = vector.load %arg1[%c0, %c0_0, %c0_1, %c0_2] : memref<2x2x16x384xf32, #tpu.memory_space<vmem>>, vector<2x2x16x384xf32>
    %1 = vector.shape_cast %0 : vector<2x2x16x384xf32> to vector<64x384xf32>
    %c0_3 = arith.constant 0 : index
    %c0_4 = arith.constant 0 : index
    %2 = vector.load %arg2[%c0_3, %c0_4] : memref<384x768xf32, #tpu.memory_space<vmem>>, vector<384x768xf32>
    %cst = arith.constant dense<0.000000e+00> : vector<64x768xf32>
    %3 = tpu.matmul %1, %2, %cst {dimension_numbers = #tpu.dot_dimension_numbers<[1], [0], [0], [1], [0, 0, 1, 1], [], []>} : vector<64x384xf32>, vector<384x768xf32>, vector<64x768xf32> -> vector<64x768xf32>
    %c0_5 = arith.constant 0 : index
    %c0_6 = arith.constant 0 : index
    %4 = vector.load %arg3[%c0_5, %c0_6] : memref<1x768xf32, #tpu.memory_space<vmem>>, vector<1x768xf32>
    %5 = vector.broadcast %4 : vector<1x768xf32> to vector<64x768xf32>
    %6 = arith.addf %3, %5 : vector<64x768xf32>
    %cst_7 = arith.constant 0.000000e+00 : f32
    %7 = vector.broadcast %cst_7 : f32 to vector<64x768xf32>
    %8 = arith.maximumf %6, %7 : vector<64x768xf32>
    %9 = vector.extract_strided_slice %8 {offsets = [0, 0], sizes = [64, 384], strides = [1, 1]} : vector<64x768xf32> to vector<64x384xf32>
    %10 = vector.extract_strided_slice %8 {offsets = [0, 384], sizes = [64, 384], strides = [1, 1]} : vector<64x768xf32> to vector<64x384xf32>
    %11 = arith.maximumf %9, %10 : vector<64x384xf32>
    %12 = vector.extract_strided_slice %11 {offsets = [0, 0], sizes = [32, 384], strides = [1, 1]} : vector<64x384xf32> to vector<32x384xf32>
    %13 = vector.extract_strided_slice %11 {offsets = [32, 0], sizes = [32, 384], strides = [1, 1]} : vector<64x384xf32> to vector<32x384xf32>
    %14 = arith.maximumf %12, %13 : vector<32x384xf32>
    %15 = vector.shape_cast %14 : vector<32x384xf32> to vector<2x16x384xf32>
    %c0_8 = arith.constant 0 : index
    %c0_9 = arith.constant 0 : index
    %c0_10 = arith.constant 0 : index
    %16 = vector.load %arg4[%c0_8, %c0_9, %c0_10] : memref<2x16x384xf32, #tpu.memory_space<vmem>>, vector<2x16x384xf32>
    tpu.vector_store %arg4[%c0_8, %c0_9, %c0_10], %15 {strides = array<i32>} : memref<2x16x384xf32, #tpu.memory_space<vmem>>, vector<2x16x384xf32>,
    return
  }
  func.func @transform_0(%arg0: i32) -> (i32, i32, i32, i32) {
    %c0_i32 = arith.constant 0 : i32
    %c0_i32_0 = arith.constant 0 : i32
    %c0_i32_1 = arith.constant 0 : i32
    %c0_i32_2 = arith.constant 0 : i32
    return %c0_i32, %arg0, %c0_i32_0, %c0_i32_1 : i32, i32, i32, i32
  }
  func.func @transform_1(%arg0: i32) -> (i32, i32) {
    %c0_i32 = arith.constant 0 : i32
    %c0_i32_0 = arith.constant 0 : i32
    %c0_i32_1 = arith.constant 0 : i32
    return %c0_i32, %c0_i32_0 : i32, i32
  }
  func.func @transform_2(%arg0: i32) -> (i32, i32) {
    %c0_i32 = arith.constant 0 : i32
    %c0_i32_0 = arith.constant 0 : i32
    %c0_i32_1 = arith.constant 0 : i32
    return %c0_i32, %c0_i32_0 : i32, i32
  }
  func.func @transform_3(%arg0: i32) -> (i32, i32, i32) {
    %c0_i32 = arith.constant 0 : i32
    %c0_i32_0 = arith.constant 0 : i32
    %c0_i32_1 = arith.constant 0 : i32
    return %arg0, %c0_i32, %c0_i32_0 : i32, i32, i32
  }
}

module attributes {stable_mosaic.version = 11 : i64} {
  func.func @_fc_head_kernel(%arg0: i32, %arg1: memref<2x1536xf32, #tpu.memory_space<vmem>>, %arg2: memref<1536x64xf32, #tpu.memory_space<vmem>>, %arg3: memref<1x64xf32, #tpu.memory_space<vmem>>, %arg4: memref<64x10xf32, #tpu.memory_space<vmem>>, %arg5: memref<1x10xf32, #tpu.memory_space<vmem>>, %arg6: memref<2x10xf32, #tpu.memory_space<vmem>>, %arg7: memref<2x64xf32, #tpu.memory_space<vmem>>) attributes {dimension_semantics = [#tpu.dimension_semantics<arbitrary>], iteration_bounds = array<i64: 4>, scalar_prefetch = 0 : i64, scratch_operands = 1 : i64, tpu.core_type = #tpu.core_type<tc>, window_params = [{transform_indices = @transform_0, window_bounds = array<i64: 2, 1536>}, {transform_indices = @transform_1, window_bounds = array<i64: 1536, 64>}, {pipeline_mode = #tpu.pipeline_mode<synchronous>, transform_indices = @transform_2, window_bounds = array<i64: 1, 64>}, {pipeline_mode = #tpu.pipeline_mode<synchronous>, transform_indices = @transform_3, window_bounds = array<i64: 64, 10>}, {pipeline_mode = #tpu.pipeline_mode<synchronous>, transform_indices = @transform_4, window_bounds = array<i64: 1, 10>}, {pipeline_mode = #tpu.pipeline_mode<synchronous>, transform_indices = @transform_5, window_bounds = array<i64: 2, 10>}]} {
    %c0_i32 = arith.constant 0 : i32
    %0 = arith.cmpi eq, %arg0, %c0_i32 : i32
    %1 = arith.extui %0 : i1 to i32
    %c0_i32_0 = arith.constant 0 : i32
    %2 = arith.cmpi ne, %1, %c0_i32_0 : i32
    scf.if %2 {
      %cst_9 = arith.constant 0.000000e+00 : f32
      %12 = vector.broadcast %cst_9 : f32 to vector<2x64xf32>
      %c0_10 = arith.constant 0 : index
      %c0_11 = arith.constant 0 : index
      %13 = vector.load %arg7[%c0_10, %c0_11] : memref<2x64xf32, #tpu.memory_space<vmem>>, vector<2x64xf32>
      tpu.vector_store %arg7[%c0_10, %c0_11], %12 {strides = array<i32>} : memref<2x64xf32, #tpu.memory_space<vmem>>, vector<2x64xf32>,
    } else {
    }
    %c0 = arith.constant 0 : index
    %c0_1 = arith.constant 0 : index
    %3 = vector.load %arg7[%c0, %c0_1] : memref<2x64xf32, #tpu.memory_space<vmem>>, vector<2x64xf32>
    %c0_2 = arith.constant 0 : index
    %c0_3 = arith.constant 0 : index
    %4 = vector.load %arg1[%c0_2, %c0_3] : memref<2x1536xf32, #tpu.memory_space<vmem>>, vector<2x1536xf32>
    %c0_4 = arith.constant 0 : index
    %c0_5 = arith.constant 0 : index
    %5 = vector.load %arg2[%c0_4, %c0_5] : memref<1536x64xf32, #tpu.memory_space<vmem>>, vector<1536x64xf32>
    %cst = arith.constant dense<0.000000e+00> : vector<2x64xf32>
    %6 = tpu.matmul %4, %5, %cst {dimension_numbers = #tpu.dot_dimension_numbers<[1], [0], [0], [1], [0, 0, 1, 1], [], []>} : vector<2x1536xf32>, vector<1536x64xf32>, vector<2x64xf32> -> vector<2x64xf32>
    %7 = arith.addf %3, %6 : vector<2x64xf32>
    %c0_6 = arith.constant 0 : index
    %c0_7 = arith.constant 0 : index
    %8 = vector.load %arg7[%c0_6, %c0_7] : memref<2x64xf32, #tpu.memory_space<vmem>>, vector<2x64xf32>
    tpu.vector_store %arg7[%c0_6, %c0_7], %7 {strides = array<i32>} : memref<2x64xf32, #tpu.memory_space<vmem>>, vector<2x64xf32>,
    %c3_i32 = arith.constant 3 : i32
    %9 = arith.cmpi eq, %arg0, %c3_i32 : i32
    %10 = arith.extui %9 : i1 to i32
    %c0_i32_8 = arith.constant 0 : i32
    %11 = arith.cmpi ne, %10, %c0_i32_8 : i32
    scf.if %11 {
      %c0_9 = arith.constant 0 : index
      %c0_10 = arith.constant 0 : index
      %12 = vector.load %arg7[%c0_9, %c0_10] : memref<2x64xf32, #tpu.memory_space<vmem>>, vector<2x64xf32>
      %c0_11 = arith.constant 0 : index
      %c0_12 = arith.constant 0 : index
      %13 = vector.load %arg3[%c0_11, %c0_12] : memref<1x64xf32, #tpu.memory_space<vmem>>, vector<1x64xf32>
      %14 = vector.broadcast %13 : vector<1x64xf32> to vector<2x64xf32>
      %15 = arith.addf %12, %14 : vector<2x64xf32>
      %cst_13 = arith.constant 0.000000e+00 : f32
      %16 = vector.broadcast %cst_13 : f32 to vector<2x64xf32>
      %17 = arith.maximumf %15, %16 : vector<2x64xf32>
      %c0_14 = arith.constant 0 : index
      %c0_15 = arith.constant 0 : index
      %18 = vector.load %arg4[%c0_14, %c0_15] : memref<64x10xf32, #tpu.memory_space<vmem>>, vector<64x10xf32>
      %cst_16 = arith.constant dense<0.000000e+00> : vector<2x10xf32>
      %19 = tpu.matmul %17, %18, %cst_16 {dimension_numbers = #tpu.dot_dimension_numbers<[1], [0], [0], [1], [0, 0, 1, 1], [], []>} : vector<2x64xf32>, vector<64x10xf32>, vector<2x10xf32> -> vector<2x10xf32>
      %c0_17 = arith.constant 0 : index
      %c0_18 = arith.constant 0 : index
      %20 = vector.load %arg5[%c0_17, %c0_18] : memref<1x10xf32, #tpu.memory_space<vmem>>, vector<1x10xf32>
      %21 = vector.broadcast %20 : vector<1x10xf32> to vector<2x10xf32>
      %22 = arith.addf %19, %21 : vector<2x10xf32>
      %c0_19 = arith.constant 0 : index
      %c0_20 = arith.constant 0 : index
      %23 = vector.load %arg6[%c0_19, %c0_20] : memref<2x10xf32, #tpu.memory_space<vmem>>, vector<2x10xf32>
      tpu.vector_store %arg6[%c0_19, %c0_20], %22 {strides = array<i32>} : memref<2x10xf32, #tpu.memory_space<vmem>>, vector<2x10xf32>,
    } else {
    }
    return
  }
  func.func @transform_0(%arg0: i32) -> (i32, i32) {
    %c0_i32 = arith.constant 0 : i32
    %c0_i32_0 = arith.constant 0 : i32
    return %c0_i32, %arg0 : i32, i32
  }
  func.func @transform_1(%arg0: i32) -> (i32, i32) {
    %c0_i32 = arith.constant 0 : i32
    %c0_i32_0 = arith.constant 0 : i32
    return %arg0, %c0_i32 : i32, i32
  }
  func.func @transform_2(%arg0: i32) -> (i32, i32) {
    %c0_i32 = arith.constant 0 : i32
    %c0_i32_0 = arith.constant 0 : i32
    %c0_i32_1 = arith.constant 0 : i32
    return %c0_i32, %c0_i32_0 : i32, i32
  }
  func.func @transform_3(%arg0: i32) -> (i32, i32) {
    %c0_i32 = arith.constant 0 : i32
    %c0_i32_0 = arith.constant 0 : i32
    %c0_i32_1 = arith.constant 0 : i32
    return %c0_i32, %c0_i32_0 : i32, i32
  }
  func.func @transform_4(%arg0: i32) -> (i32, i32) {
    %c0_i32 = arith.constant 0 : i32
    %c0_i32_0 = arith.constant 0 : i32
    %c0_i32_1 = arith.constant 0 : i32
    return %c0_i32, %c0_i32_0 : i32, i32
  }
  func.func @transform_5(%arg0: i32) -> (i32, i32) {
    %c0_i32 = arith.constant 0 : i32
    %c0_i32_0 = arith.constant 0 : i32
    %c0_i32_1 = arith.constant 0 : i32
    return %c0_i32, %c0_i32_0 : i32, i32
  }
}

</mosaic_0001>

<bundles_post_ra>
// kernel: simple_cnn_forward.2
= control target key start
LH: loop header
LB: loop body
LE: loop exit
PB: predicated region body
PF: predicated region fallthrough
CT: control target
= control target key end

     0   :  { %v1522_v3 = vmov 0.0   ;;  %s2758_s1 = inlined_call_operand.vmem [shape: f32[384,768], index: 1, kind: input, shape index: {}]   ;;  %s2759_s0 = inlined_call_operand.vmem [shape: f32[2,2,16,384], index: 0, kind: input, shape index: {}]   ;;  %s2760_s2 = inlined_call_operand.vmem [shape: f32[1,768], index: 2, kind: input, shape index: {}]   ;;  %s2761_s3 = inlined_call_operand.vmem [shape: f32[2,16,384], index: 3, kind: output, shape index: {}]  }
   0x1   :  { %v39_v0 = vld [vmem:[%s2758_s1 + $0x8] sm:$0xff]  ;;  %v45_v1 = vld [vmem:[%s2758_s1 + $0x38] sm:$0xff]  ;;  %535 = vmatprep.mubr.f32.mxu0 %v1522_v3  ;;  %v38_v6 = vld [vmem:[%s2758_s1] sm:$0xff] }
   0x2   :  { %v231_v2 = vld [vmem:[%s2758_s1 + $0x608] sm:$0xff]  ;;  %v1136_v4 = vpack.c.bf16 %v45_v1, %v39_v0  ;;  %v237_v5 = vld [vmem:[%s2758_s1 + $0x638] sm:$0xff]  ;;  %v44_v7 = vld [vmem:[%s2758_s1 + $0x30] sm:$0xff] }
   0x3   :  { %v1200_v8 = vpack.c.bf16 %v237_v5, %v231_v2  ;;  %v1138_v9 = vpack.c.bf16 %v44_v7, %v38_v6  ;;  %v230_v10 = vld [vmem:[%s2758_s1 + $0x600] sm:$0xff]  ;;  %v236_v11 = vld [vmem:[%s2758_s1 + $0x630] sm:$0xff]  ;;  %v51_v12 = vld [vmem:[%s2758_s1 + $0x68] sm:$0xff] }
   0x4   :  { %1137 = vmatprep.subr.bf16.mxu1 %v1136_v4  ;;  %v1202_v13 = vpack.c.bf16 %v236_v11, %v230_v10  ;;  %v57_v14 = vld [vmem:[%s2758_s1 + $0x98] sm:$0xff]  ;;  %v243_v15 = vld [vmem:[%s2758_s1 + $0x668] sm:$0xff]  ;;  %v50_v19 = vld [vmem:[%s2758_s1 + $0x60] sm:$0xff] }
   0x5   :  { %v249_v16 = vld [vmem:[%s2758_s1 + $0x698] sm:$0xff]  ;;  %1201 = vmatprep.subr.bf16.mxu0 %v1200_v8  ;;  %1139 = vmatpush1.bf16.msra.mxu1 %v1138_v9  ;;  %v1140_v17 = vpack.c.bf16 %v57_v14, %v51_v12  ;;  %v56_v20 = vld [vmem:[%s2758_s1 + $0x90] sm:$0xff]  ;;  %v242_v21 = vld [vmem:[%s2758_s1 + $0x660] sm:$0xff] }
   0x6   :  { %v1204_v18 = vpack.c.bf16 %v249_v16, %v243_v15  ;;  %1203 = vmatpush1.bf16.msra.mxu0 %v1202_v13  ;;  %v1142_v22 = vpack.c.bf16 %v56_v20, %v50_v19  ;;  %v248_v23 = vld [vmem:[%s2758_s1 + $0x690] sm:$0xff]  ;;  %v63_v24 = vld [vmem:[%s2758_s1 + $0xc8] sm:$0xff]  ;;  %v69_v25 = vld [vmem:[%s2758_s1 + $0xf8] sm:$0xff] }
   0x7   :  { %1141 = vmatprep.subr.bf16.mxu1 %v1140_v17  ;;  %v1206_v26 = vpack.c.bf16 %v248_v23, %v242_v21  ;;  %v1144_v27 = vpack.c.bf16 %v69_v25, %v63_v24  ;;  %v255_v28 = vld [vmem:[%s2758_s1 + $0x6c8] sm:$0xff]  ;;  %v261_v29 = vld [vmem:[%s2758_s1 + $0x6f8] sm:$0xff]  ;;  %v62_v30 = vld [vmem:[%s2758_s1 + $0xc0] sm:$0xff] }
   0x8   :  { %1205 = vmatprep.subr.bf16.mxu0 %v1204_v18  ;;  %v1208_v31 = vpack.c.bf16 %v261_v29, %v255_v28  ;;  %v68_v32 = vld [vmem:[%s2758_s1 + $0xf0] sm:$0xff]  ;;  %v254_v33 = vld [vmem:[%s2758_s1 + $0x6c0] sm:$0xff]  ;;  %v75_v36 = vld [vmem:[%s2758_s1 + $0x128] sm:$0xff] }
   0x9   :  { %v260_v34 = vld [vmem:[%s2758_s1 + $0x6f0] sm:$0xff]  ;;  %1143 = vmatpush1.bf16.msra.mxu1 %v1142_v22  ;;  %v1146_v35 = vpack.c.bf16 %v68_v32, %v62_v30  ;;  %v81_v37 = vld [vmem:[%s2758_s1 + $0x158] sm:$0xff]  ;;  %v267_v38 = vld [vmem:[%s2758_s1 + $0x728] sm:$0xff] }
   0xa   :  { %1207 = vmatpush1.bf16.msra.mxu0 %v1206_v26  ;;  %1145 = vmatprep.subr.bf16.mxu1 %v1144_v27  ;;  %v1210_v39 = vpack.c.bf16 %v260_v34, %v254_v33  ;;  %v1148_v40 = vpack.c.bf16 %v81_v37, %v75_v36  ;;  %v273_v41 = vld [vmem:[%s2758_s1 + $0x758] sm:$0xff]  ;;  %v74_v42 = vld [vmem:[%s2758_s1 + $0x120] sm:$0xff]  ;;  %v80_v43 = vld [vmem:[%s2758_s1 + $0x150] sm:$0xff] }
   0xb   :  { %1209 = vmatprep.subr.bf16.mxu0 %v1208_v31  ;;  %v1212_v44 = vpack.c.bf16 %v273_v41, %v267_v38  ;;  %v266_v45 = vld [vmem:[%s2758_s1 + $0x720] sm:$0xff]  ;;  %v272_v46 = vld [vmem:[%s2758_s1 + $0x750] sm:$0xff]  ;;  %v87_v47 = vld [vmem:[%s2758_s1 + $0x188] sm:$0xff]  ;;  %v1150_v51 = vpack.c.bf16 %v80_v43, %v74_v42 }
   0xc   :  { %v93_v48 = vld [vmem:[%s2758_s1 + $0x1b8] sm:$0xff]  ;;  %v279_v49 = vld [vmem:[%s2758_s1 + $0x788] sm:$0xff]  ;;  %v1214_v52 = vpack.c.bf16 %v272_v46, %v266_v45  ;;  %v86_v54 = vld [vmem:[%s2758_s1 + $0x180] sm:$0xff] }
   0xd   :  { %v285_v50 = vld [vmem:[%s2758_s1 + $0x7b8] sm:$0xff]  ;;  %1147 = vmatpush1.bf16.msra.mxu1 %v1146_v35  ;;  %v1152_v53 = vpack.c.bf16 %v93_v48, %v87_v47  ;;  %v92_v55 = vld [vmem:[%s2758_s1 + $0x1b0] sm:$0xff]  ;;  %v278_v56 = vld [vmem:[%s2758_s1 + $0x780] sm:$0xff] }
   0xe   :  { %1211 = vmatpush1.bf16.msra.mxu0 %v1210_v39  ;;  %1149 = vmatprep.subr.bf16.mxu1 %v1148_v40  ;;  %v1216_v57 = vpack.c.bf16 %v285_v50, %v279_v49  ;;  %v284_v58 = vld [vmem:[%s2758_s1 + $0x7b0] sm:$0xff]  ;;  %v99_v59 = vld [vmem:[%s2758_s1 + $0x1e8] sm:$0xff]  ;;  %v105_v60 = vld [vmem:[%s2758_s1 + $0x218] sm:$0xff]  ;;  %v1154_v63 = vpack.c.bf16 %v92_v55, %v86_v54 }
   0xf   :  { %1213 = vmatprep.subr.bf16.mxu0 %v1212_v44  ;;  %v291_v61 = vld [vmem:[%s2758_s1 + $0x7e8] sm:$0xff]  ;;  %v297_v62 = vld [vmem:[%s2758_s1 + $0x818] sm:$0xff]  ;;  %v1218_v0 = vpack.c.bf16 %v284_v58, %v278_v56  ;;  %v1156_v1 = vpack.c.bf16 %v105_v60, %v99_v59  ;;  %v98_v2 = vld [vmem:[%s2758_s1 + $0x1e0] sm:$0xff] }
  0x10   :  { %v104_v4 = vld [vmem:[%s2758_s1 + $0x210] sm:$0xff]  ;;  %v290_v5 = vld [vmem:[%s2758_s1 + $0x7e0] sm:$0xff]  ;;  %v1220_v6 = vpack.c.bf16 %v297_v62, %v291_v61  ;;  %v111_v8 = vld [vmem:[%s2758_s1 + $0x248] sm:$0xff] }
  0x11   :  { %1151 = vmatpush1.bf16.msra.mxu1 %v1150_v51  ;;  %v296_v7 = vld [vmem:[%s2758_s1 + $0x810] sm:$0xff]  ;;  %v117_v9 = vld [vmem:[%s2758_s1 + $0x278] sm:$0xff]  ;;  %v303_v10 = vld [vmem:[%s2758_s1 + $0x848] sm:$0xff]  ;;  %v1158_v12 = vpack.c.bf16 %v104_v4, %v98_v2 }
  0x12   :  { %1215 = vmatpush1.bf16.msra.mxu0 %v1214_v52  ;;  %1153 = vmatprep.subr.bf16.mxu1 %v1152_v53  ;;  %v309_v11 = vld [vmem:[%s2758_s1 + $0x878] sm:$0xff]  ;;  %v1222_v13 = vpack.c.bf16 %v296_v7, %v290_v5  ;;  %v1160_v14 = vpack.c.bf16 %v117_v9, %v111_v8  ;;  %v110_v15 = vld [vmem:[%s2758_s1 + $0x240] sm:$0xff]  ;;  %v116_v16 = vld [vmem:[%s2758_s1 + $0x270] sm:$0xff] }
  0x13   :  { %1217 = vmatprep.subr.bf16.mxu0 %v1216_v57  ;;  %v302_v17 = vld [vmem:[%s2758_s1 + $0x840] sm:$0xff]  ;;  %v1224_v18 = vpack.c.bf16 %v309_v11, %v303_v10  ;;  %v308_v19 = vld [vmem:[%s2758_s1 + $0x870] sm:$0xff]  ;;  %v123_v20 = vld [vmem:[%s2758_s1 + $0x2a8] sm:$0xff]  ;;  %v1162_v24 = vpack.c.bf16 %v116_v16, %v110_v15 }
  0x14   :  { %v129_v21 = vld [vmem:[%s2758_s1 + $0x2d8] sm:$0xff]  ;;  %v315_v22 = vld [vmem:[%s2758_s1 + $0x8a8] sm:$0xff]  ;;  %v1226_v25 = vpack.c.bf16 %v308_v19, %v302_v17  ;;  %v122_v27 = vld [vmem:[%s2758_s1 + $0x2a0] sm:$0xff] }
  0x15   :  { %1155 = vmatpush1.bf16.msra.mxu1 %v1154_v63  ;;  %v321_v23 = vld [vmem:[%s2758_s1 + $0x8d8] sm:$0xff]  ;;  %v1164_v26 = vpack.c.bf16 %v129_v21, %v123_v20  ;;  %v128_v28 = vld [vmem:[%s2758_s1 + $0x2d0] sm:$0xff]  ;;  %v314_v29 = vld [vmem:[%s2758_s1 + $0x8a0] sm:$0xff] }
  0x16   :  { %1219 = vmatpush1.bf16.msra.mxu0 %v1218_v0  ;;  %1157 = vmatprep.subr.bf16.mxu1 %v1156_v1  ;;  %v1228_v30 = vpack.c.bf16 %v321_v23, %v315_v22  ;;  %v320_v31 = vld [vmem:[%s2758_s1 + $0x8d0] sm:$0xff]  ;;  %v135_v32 = vld [vmem:[%s2758_s1 + $0x308] sm:$0xff]  ;;  %v141_v33 = vld [vmem:[%s2758_s1 + $0x338] sm:$0xff]  ;;  %v1166_v36 = vpack.c.bf16 %v128_v28, %v122_v27 }
  0x17   :  { %1221 = vmatprep.subr.bf16.mxu0 %v1220_v6  ;;  %v43_v34 = vld [vmem:[%s2758_s1 + $0x28] sm:$0xff]  ;;  %v49_v35 = vld [vmem:[%s2758_s1 + $0x58] sm:$0xff]  ;;  %v1230_v37 = vpack.c.bf16 %v320_v31, %v314_v29  ;;  %v1168_v38 = vpack.c.bf16 %v141_v33, %v135_v32  ;;  %v134_v39 = vld [vmem:[%s2758_s1 + $0x300] sm:$0xff] }
  0x18   :  { %v140_v40 = vld [vmem:[%s2758_s1 + $0x330] sm:$0xff]  ;;  %v42_v41 = vld [vmem:[%s2758_s1 + $0x20] sm:$0xff]  ;;  %v1328_v42 = vpack.c.bf16 %v49_v35, %v43_v34  ;;  %v147_v44 = vld [vmem:[%s2758_s1 + $0x368] sm:$0xff] }
  0x19   :  { %1159 = vmatpush1.bf16.msra.mxu1 %v1158_v12  ;;  %v48_v43 = vld [vmem:[%s2758_s1 + $0x50] sm:$0xff]  ;;  %v153_v45 = vld [vmem:[%s2758_s1 + $0x398] sm:$0xff]  ;;  %v55_v46 = vld [vmem:[%s2758_s1 + $0x88] sm:$0xff]  ;;  %v1170_v48 = vpack.c.bf16 %v140_v40, %v134_v39 }
  0x1a   :  { %1223 = vmatpush1.bf16.msra.mxu0 %v1222_v13  ;;  %1161 = vmatprep.subr.bf16.mxu1 %v1160_v14  ;;  %v61_v47 = vld [vmem:[%s2758_s1 + $0xb8] sm:$0xff]  ;;  %v1775_v49 = vld [vmem:[%s2759_s0 + $0x10] sm:$0xff]  ;;  %v1330_v50 = vpack.c.bf16 %v48_v43, %v42_v41  ;;  %v1172_v51 = vpack.c.bf16 %v153_v45, %v147_v44  ;;  %v146_v52 = vld [vmem:[%s2758_s1 + $0x360] sm:$0xff] }
  0x1b   :  { %1225 = vmatprep.subr.bf16.mxu0 %v1224_v18  ;;  %v152_v53 = vld [vmem:[%s2758_s1 + $0x390] sm:$0xff]  ;;  %v54_v54 = vld [vmem:[%s2758_s1 + $0x80] sm:$0xff]  ;;  %v1332_v55 = vpack.c.bf16 %v61_v47, %v55_v46  ;;  %v159_v57 = vld [vmem:[%s2758_s1 + $0x3c8] sm:$0xff] }
  0x1c   :  { %v60_v56 = vld [vmem:[%s2758_s1 + $0xb0] sm:$0xff]  ;;  %v165_v58 = vld [vmem:[%s2758_s1 + $0x3f8] sm:$0xff]  ;;  %v67_v59 = vld [vmem:[%s2758_s1 + $0xe8] sm:$0xff]  ;;  %v1174_v61 = vpack.c.bf16 %v152_v53, %v146_v52 }
  0x1d   :  { %1163 = vmatpush1.bf16.msra.mxu1 %v1162_v24  ;;  %v73_v60 = vld [vmem:[%s2758_s1 + $0x118] sm:$0xff]  ;;  %v1334_v62 = vpack.c.bf16 %v60_v56, %v54_v54  ;;  %v1176_v63 = vpack.c.bf16 %v165_v58, %v159_v57  ;;  %v158_v0 = vld [vmem:[%s2758_s1 + $0x3c0] sm:$0xff]  ;;  %v164_v1 = vld [vmem:[%s2758_s1 + $0x3f0] sm:$0xff] }
  0x1e   :  { %1227 = vmatpush1.bf16.msra.mxu0 %v1226_v25  ;;  %1165 = vmatprep.subr.bf16.mxu1 %v1164_v26  ;;  %v66_v2 = vld [vmem:[%s2758_s1 + $0xe0] sm:$0xff]  ;;  %v1336_v4 = vpack.c.bf16 %v73_v60, %v67_v59  ;;  %v72_v5 = vld [vmem:[%s2758_s1 + $0x110] sm:$0xff]  ;;  %v171_v6 = vld [vmem:[%s2758_s1 + $0x428] sm:$0xff]  ;;  %v1178_v10 = vpack.c.bf16 %v164_v1, %v158_v0 }
  0x1f   :  { %1229 = vmatprep.subr.bf16.mxu0 %v1228_v30  ;;  %v177_v7 = vld [vmem:[%s2758_s1 + $0x458] sm:$0xff]  ;;  %v79_v8 = vld [vmem:[%s2758_s1 + $0x148] sm:$0xff]  ;;  %v1338_v11 = vpack.c.bf16 %v72_v5, %v66_v2  ;;  %v170_v13 = vld [vmem:[%s2758_s1 + $0x420] sm:$0xff] }
  0x20   :  { %v85_v9 = vld [vmem:[%s2758_s1 + $0x178] sm:$0xff]  ;;  %v1180_v12 = vpack.c.bf16 %v177_v7, %v171_v6  ;;  %v176_v14 = vld [vmem:[%s2758_s1 + $0x450] sm:$0xff]  ;;  %v78_v15 = vld [vmem:[%s2758_s1 + $0x140] sm:$0xff] }
  0x21   :  { %1167 = vmatpush1.bf16.msra.mxu1 %v1166_v36  ;;  %v1340_v16 = vpack.c.bf16 %v85_v9, %v79_v8  ;;  %v84_v17 = vld [vmem:[%s2758_s1 + $0x170] sm:$0xff]  ;;  %v183_v18 = vld [vmem:[%s2758_s1 + $0x488] sm:$0xff]  ;;  %v189_v19 = vld [vmem:[%s2758_s1 + $0x4b8] sm:$0xff]  ;;  %v1182_v23 = vpack.c.bf16 %v176_v14, %v170_v13 }
  0x22   :  { %1231 = vmatpush1.bf16.msra.mxu0 %v1230_v37  ;;  %1169 = vmatprep.subr.bf16.mxu1 %v1168_v38  ;;  %v91_v20 = vld [vmem:[%s2758_s1 + $0x1a8] sm:$0xff]  ;;  %v97_v21 = vld [vmem:[%s2758_s1 + $0x1d8] sm:$0xff]  ;;  %v182_v24 = vld [vmem:[%s2758_s1 + $0x480] sm:$0xff]  ;;  %v1342_v25 = vpack.c.bf16 %v84_v17, %v78_v15  ;;  %v1184_v26 = vpack.c.bf16 %v189_v19, %v183_v18 }
  0x23   :  { %1329 = vmatprep.subr.bf16.mxu0 %v1328_v42  ;;  %v1854_v22 = vld [vmem:[%s2759_s0 + $0x8] sm:$0xff]  ;;  %v188_v27 = vld [vmem:[%s2758_s1 + $0x4b0] sm:$0xff]  ;;  %v90_v28 = vld [vmem:[%s2758_s1 + $0x1a0] sm:$0xff]  ;;  %v1344_v30 = vpack.c.bf16 %v97_v21, %v91_v20 }
  0x24   :  { %422 = vmatprep.mubr.f32.mxu1 %v1854_v22  ;;  %v96_v29 = vld [vmem:[%s2758_s1 + $0x1d0] sm:$0xff]  ;;  %v195_v31 = vld [vmem:[%s2758_s1 + $0x4e8] sm:$0xff]  ;;  %v201_v32 = vld [vmem:[%s2758_s1 + $0x518] sm:$0xff]  ;;  %v1186_v36 = vpack.c.bf16 %v188_v27, %v182_v24 }
  0x25   :  { %1171 = vmatpush1.bf16.msra.mxu1 %v1170_v48  ;;  %536 = vmatmul.mubr.f32.vlgmr.msra.gmra.mrb[0].mxu0 %v1775_v49  ;;  %v1878_v33 = vld [vmem:[%s2759_s0 + $0x28] sm:$0xff]  ;;  %v109_v35 = vld [vmem:[%s2758_s1 + $0x238] sm:$0xff]  ;;  %v194_v37 = vld [vmem:[%s2758_s1 + $0x4e0] sm:$0xff]  ;;  %v1346_v38 = vpack.c.bf16 %v96_v29, %v90_v28  ;;  %v1188_v39 = vpack.c.bf16 %v201_v32, %v195_v31 }
  0x26   :  { %1331 = vmatpush1.bf16.msra.mxu0 %v1330_v50  ;;  %1173 = vmatprep.subr.bf16.mxu1 %v1172_v51  ;;  %v103_v34 = vld [vmem:[%s2758_s1 + $0x208] sm:$0xff]  ;;  %v200_v40 = vld [vmem:[%s2758_s1 + $0x510] sm:$0xff]  ;;  %v102_v41 = vld [vmem:[%s2758_s1 + $0x200] sm:$0xff] }
  0x27   :  { %1333 = vmatprep.subr.bf16.mxu0 %v1332_v55  ;;  %541 = vmatprep.mubr.f32.mxu0 %v1522_v3  ;;  %v1900_v42 = vld [vmem:[%s2759_s0 + $0x40] sm:$0xff]  ;;  %v1348_v43 = vpack.c.bf16 %v109_v35, %v103_v34  ;;  %v108_v44 = vld [vmem:[%s2758_s1 + $0x230] sm:$0xff]  ;;  %v207_v45 = vld [vmem:[%s2758_s1 + $0x548] sm:$0xff]  ;;  %v1190_v50 = vpack.c.bf16 %v200_v40, %v194_v37 }
  0x28   :  { %v213_v46 = vld [vmem:[%s2758_s1 + $0x578] sm:$0xff]  ;;  %v115_v47 = vld [vmem:[%s2758_s1 + $0x268] sm:$0xff]  ;;  %v1350_v52 = vpack.c.bf16 %v108_v44, %v102_v41  ;;  %v206_v54 = vld [vmem:[%s2758_s1 + $0x540] sm:$0xff] }
  0x29   :  { %1175 = vmatpush1.bf16.msra.mxu1 %v1174_v61  ;;  %542 = vmatmul.mubr.f32.gmra.mrb[2].mxu0 %v1878_v33  ;;  %v121_v48 = vld [vmem:[%s2758_s1 + $0x298] sm:$0xff]  ;;  %v1192_v53 = vpack.c.bf16 %v213_v46, %v207_v45  ;;  %v212_v55 = vld [vmem:[%s2758_s1 + $0x570] sm:$0xff]  ;;  %v114_v56 = vld [vmem:[%s2758_s1 + $0x260] sm:$0xff] }
  0x2a   :  { %1335 = vmatpush1.bf16.msra.mxu0 %v1334_v62  ;;  %1177 = vmatprep.subr.bf16.mxu1 %v1176_v63  ;;  %v1922_v51 = vld [vmem:[%s2759_s0 + $0x58] sm:$0xff]  ;;  %v1352_v57 = vpack.c.bf16 %v121_v48, %v115_v47  ;;  %v120_v58 = vld [vmem:[%s2758_s1 + $0x290] sm:$0xff]  ;;  %v219_v59 = vld [vmem:[%s2758_s1 + $0x5a8] sm:$0xff]  ;;  %v1194_v63 = vpack.c.bf16 %v212_v55, %v206_v54 }
  0x2b   :  { %1337 = vmatprep.subr.bf16.mxu0 %v1336_v4  ;;  %547 = vmatprep.mubr.f32.mxu0 %v1522_v3  ;;  %v225_v60 = vld [vmem:[%s2758_s1 + $0x5d8] sm:$0xff]  ;;  %v127_v61 = vld [vmem:[%s2758_s1 + $0x2c8] sm:$0xff]  ;;  %v1953_v0 = vld [vmem:[%s2759_s0 + $0x70] sm:$0xff]  ;;  %v1354_v1 = vpack.c.bf16 %v120_v58, %v114_v56 }
  0x2c   :  { %v133_v62 = vld [vmem:[%s2758_s1 + $0x2f8] sm:$0xff]  ;;  %v1196_v2 = vpack.c.bf16 %v225_v60, %v219_v59  ;;  %v218_v4 = vld [vmem:[%s2758_s1 + $0x5a0] sm:$0xff]  ;;  %v224_v5 = vld [vmem:[%s2758_s1 + $0x5d0] sm:$0xff] }
  0x2d   :  { %1179 = vmatpush1.bf16.msra.mxu1 %v1178_v10  ;;  %548 = vmatmul.mubr.f32.gmra.mrb[4].mxu0 %v1900_v42  ;;  %v126_v6 = vld [vmem:[%s2758_s1 + $0x2c0] sm:$0xff]  ;;  %v1356_v7 = vpack.c.bf16 %v133_v62, %v127_v61  ;;  %v132_v8 = vld [vmem:[%s2758_s1 + $0x2f0] sm:$0xff]  ;;  %v41_v9 = vld [vmem:[%s2758_s1 + $0x18] sm:$0xff]  ;;  %v1198_v13 = vpack.c.bf16 %v224_v5, %v218_v4 }
  0x2e   :  { %1339 = vmatpush1.bf16.msra.mxu0 %v1338_v11  ;;  %1181 = vmatprep.subr.bf16.mxu1 %v1180_v12  ;;  %v47_v10 = vld [vmem:[%s2758_s1 + $0x48] sm:$0xff]  ;;  %v145_v12 = vld [vmem:[%s2758_s1 + $0x358] sm:$0xff]  ;;  %v1358_v15 = vpack.c.bf16 %v132_v8, %v126_v6  ;;  %v40_v17 = vld [vmem:[%s2758_s1 + $0x10] sm:$0xff] }
  0x2f   :  { %1341 = vmatprep.subr.bf16.mxu0 %v1340_v16  ;;  %553 = vmatprep.mubr.f32.mxu0 %v1522_v3  ;;  %v139_v11 = vld [vmem:[%s2758_s1 + $0x328] sm:$0xff]  ;;  %v1232_v16 = vpack.c.bf16 %v47_v10, %v41_v9  ;;  %v46_v18 = vld [vmem:[%s2758_s1 + $0x40] sm:$0xff]  ;;  %v144_v21 = vld [vmem:[%s2758_s1 + $0x350] sm:$0xff] }
  0x30   :  { %v1984_v14 = vld [vmem:[%s2759_s0 + $0x88] sm:$0xff]  ;;  %v138_v19 = vld [vmem:[%s2758_s1 + $0x320] sm:$0xff]  ;;  %v1360_v20 = vpack.c.bf16 %v145_v12, %v139_v11  ;;  %v1234_v28 = vpack.c.bf16 %v46_v18, %v40_v17  ;;  %v52_v32 = vld [vmem:[%s2758_s1 + $0x70] sm:$0xff] }
  0x31   :  { %1183 = vmatpush1.bf16.msra.mxu1 %v1182_v23  ;;  %554 = vmatmul.mubr.f32.gmra.mrb[6].mxu0 %v1922_v51  ;;  %v53_v23 = vld [vmem:[%s2758_s1 + $0x78] sm:$0xff]  ;;  %v59_v24 = vld [vmem:[%s2758_s1 + $0xa8] sm:$0xff]  ;;  %v2014_v27 = vld [vmem:[%s2759_s0] sm:$0xff] }
  0x32   :  { %1343 = vmatpush1.bf16.msra.mxu0 %v1342_v25  ;;  %1185 = vmatprep.subr.bf16.mxu1 %v1184_v26  ;;  %v151_v25 = vld [vmem:[%s2758_s1 + $0x388] sm:$0xff]  ;;  %v157_v26 = vld [vmem:[%s2758_s1 + $0x3b8] sm:$0xff]  ;;  %v2020_v29 = vld [vmem:[%s2759_s0 + $0xa0] sm:$0xff]  ;;  %v1236_v31 = vpack.c.bf16 %v59_v24, %v53_v23 }
  0x33   :  { %1345 = vmatprep.subr.bf16.mxu0 %v1344_v30  ;;  %559 = vmatprep.mubr.f32.mxu0 %v1522_v3  ;;  %v1362_v30 = vpack.c.bf16 %v144_v21, %v138_v19  ;;  %v58_v34 = vld [vmem:[%s2758_s1 + $0xa0] sm:$0xff]  ;;  %v156_v37 = vld [vmem:[%s2758_s1 + $0x3b0] sm:$0xff]  ;;  %v163_v40 = vld [vmem:[%s2758_s1 + $0x3e8] sm:$0xff] }
  0x34   :  { %v150_v35 = vld [vmem:[%s2758_s1 + $0x380] sm:$0xff]  ;;  %v169_v41 = vld [vmem:[%s2758_s1 + $0x418] sm:$0xff]  ;;  %v64_v44 = vld [vmem:[%s2758_s1 + $0xd0] sm:$0xff] }
  0x35   :  { %1187 = vmatpush1.bf16.msra.mxu1 %v1186_v36  ;;  %560 = vmatmul.mubr.f32.gmra.mrb[8].mxu0 %v1953_v0  ;;  %v1364_v36 = vpack.c.bf16 %v157_v26, %v151_v25  ;;  %v2055_v45 = vld [vmem:[%s2759_s0 + $0xb8] sm:$0xff]  ;;  %v2060_v46 = vld [vmem:[%s2759_s0 + $0x20] sm:$0xff]  ;;  %v1366_v47 = vpack.c.bf16 %v156_v37, %v150_v35  ;;  %v1368_v54 = vpack.c.bf16 %v169_v41, %v163_v40  ;;  %v83_v56 = vld [vmem:[%s2758_s1 + $0x168] sm:$0xff] }
  0x36   :  { %1347 = vmatpush1.bf16.msra.mxu0 %v1346_v38  ;;  %1189 = vmatprep.subr.bf16.mxu1 %v1188_v39  ;;  %v65_v38 = vld [vmem:[%s2758_s1 + $0xd8] sm:$0xff]  ;;  %v71_v39 = vld [vmem:[%s2758_s1 + $0x108] sm:$0xff]  ;;  %v76_v61 = vld [vmem:[%s2758_s1 + $0x130] sm:$0xff] }
  0x37   :  { %1349 = vmatprep.subr.bf16.mxu0 %v1348_v43  ;;  %565 = vmatprep.mubr.f32.mxu0 %v1522_v3  ;;  %v1238_v43 = vpack.c.bf16 %v58_v34, %v52_v32  ;;  %v1240_v48 = vpack.c.bf16 %v71_v39, %v65_v38  ;;  %v77_v55 = vld [vmem:[%s2758_s1 + $0x138] sm:$0xff]  ;;  %v175_v58 = vld [vmem:[%s2758_s1 + $0x448] sm:$0xff]  ;;  %v174_v4 = vld [vmem:[%s2758_s1 + $0x440] sm:$0xff] }
  0x38   :  { %v181_v59 = vld [vmem:[%s2758_s1 + $0x478] sm:$0xff]  ;;  %v2109_v5 = vld [vmem:[%s2759_s0 + $0x30] sm:$0xff]  ;;  %v95_v9 = vld [vmem:[%s2758_s1 + $0x1c8] sm:$0xff] }
  0x39   :  { %1191 = vmatpush1.bf16.msra.mxu1 %v1190_v50  ;;  %566 = vmatmul.mubr.f32.gmra.mrb[10].mxu0 %v1984_v14  ;;  %v70_v50 = vld [vmem:[%s2758_s1 + $0x100] sm:$0xff]  ;;  %v2098_v62 = vld [vmem:[%s2759_s0 + $0x38] sm:$0xff]  ;;  %v1372_v6 = vpack.c.bf16 %v181_v59, %v175_v58  ;;  %v187_v10 = vld [vmem:[%s2758_s1 + $0x4a8] sm:$0xff] }
  0x3a   :  { %1351 = vmatpush1.bf16.msra.mxu0 %v1350_v52  ;;  %1193 = vmatprep.subr.bf16.mxu1 %v1192_v53  ;;  %v162_v52 = vld [vmem:[%s2758_s1 + $0x3e0] sm:$0xff]  ;;  %v168_v53 = vld [vmem:[%s2758_s1 + $0x410] sm:$0xff]  ;;  %v1242_v60 = vpack.c.bf16 %v70_v50, %v64_v44  ;;  %v89_v8 = vld [vmem:[%s2758_s1 + $0x198] sm:$0xff] }
  0x3b   :  { %1353 = vmatprep.subr.bf16.mxu0 %v1352_v57  ;;  %571 = vmatprep.mubr.f32.mxu0 %v1522_v3  ;;  %v2081_v57 = vld [vmem:[%s2759_s0 + $0x18] sm:$0xff]  ;;  %v2131_v12 = vld [vmem:[%s2759_s0 + $0x50] sm:$0xff]  ;;  %v1248_v18 = vpack.c.bf16 %v95_v9, %v89_v8  ;;  %v186_v19 = vld [vmem:[%s2758_s1 + $0x4a0] sm:$0xff] }
  0x3c   :  { %v193_v11 = vld [vmem:[%s2758_s1 + $0x4d8] sm:$0xff]  ;;  %v2149_v21 = vld [vmem:[%s2759_s0 + $0x48] sm:$0xff]  ;;  %v100_v32 = vld [vmem:[%s2758_s1 + $0x1f0] sm:$0xff] }
  0x3d   :  { %1195 = vmatpush1.bf16.msra.mxu1 %v1194_v63  ;;  %572 = vmatmul.mubr.f32.gmra.mrb[12].mxu0 %v2020_v29  ;;  %v1370_v63 = vpack.c.bf16 %v168_v53, %v162_v52  ;;  %v1376_v23 = vpack.c.bf16 %v193_v11, %v187_v10  ;;  %v101_v24 = vld [vmem:[%s2758_s1 + $0x1f8] sm:$0xff]  ;;  %v107_v25 = vld [vmem:[%s2758_s1 + $0x228] sm:$0xff]  ;;  %v2176_v34 = vld [vmem:[%s2759_s0 + $0x60] sm:$0xff] }
  0x3e   :  { %1355 = vmatpush1.bf16.msra.mxu0 %v1354_v1  ;;  %1197 = vmatprep.subr.bf16.mxu1 %v1196_v2  ;;  %v1244_v1 = vpack.c.bf16 %v83_v56, %v77_v55  ;;  %v82_v2 = vld [vmem:[%s2758_s1 + $0x160] sm:$0xff]  ;;  %v2160_v26 = vld [vmem:[%s2759_s0 + $0x68] sm:$0xff]  ;;  %v204_v39 = vld [vmem:[%s2758_s1 + $0x530] sm:$0xff] }
  0x3f   :  { %1357 = vmatprep.subr.bf16.mxu0 %v1356_v7  ;;  %577 = vmatprep.mubr.f32.mxu0 %v1522_v3  ;;  %v180_v7 = vld [vmem:[%s2758_s1 + $0x470] sm:$0xff]  ;;  %v106_v37 = vld [vmem:[%s2758_s1 + $0x220] sm:$0xff]  ;;  %v113_v41 = vld [vmem:[%s2758_s1 + $0x258] sm:$0xff] }
  0x40   :  { %v1374_v17 = vpack.c.bf16 %v180_v7, %v174_v4  ;;  %v198_v38 = vld [vmem:[%s2758_s1 + $0x500] sm:$0xff]  ;;  %v1254_v50 = vpack.c.bf16 %v106_v37, %v100_v32  ;;  %v112_v52 = vld [vmem:[%s2758_s1 + $0x250] sm:$0xff]  ;;  %v2212_v53 = vld [vmem:[%s2759_s0 + $0x78] sm:$0xff] }
  0x41   :  { %1199 = vmatpush1.bf16.msra.mxu1 %v1198_v13  ;;  %578 = vmatmul.mubr.f32.gmra.mrb[14].mxu0 %v2055_v45  ;;  %v1246_v13 = vpack.c.bf16 %v82_v2, %v76_v61  ;;  %v2196_v44 = vld [vmem:[%s2759_s0 + $0x80] sm:$0xff]  ;;  %v2223_v59 = vld [vmem:[%s2759_s0 + $0x98] sm:$0xff]  ;;  %v216_v61 = vld [vmem:[%s2758_s1 + $0x590] sm:$0xff] }
  0x42   :  { %1359 = vmatpush1.bf16.msra.mxu0 %v1358_v15  ;;  %1233 = vmatprep.subr.bf16.mxu1 %v1232_v16  ;;  %v88_v15 = vld [vmem:[%s2758_s1 + $0x190] sm:$0xff]  ;;  %v94_v16 = vld [vmem:[%s2758_s1 + $0x1c0] sm:$0xff]  ;;  %v223_v2 = vld [vmem:[%s2758_s1 + $0x5c8] sm:$0xff] }
  0x43   :  { %1361 = vmatprep.subr.bf16.mxu0 %v1360_v20  ;;  %874 = vmatprep.mubr.f32.mxu0 %v1854_v22  ;;  %v192_v20 = vld [vmem:[%s2758_s1 + $0x4d0] sm:$0xff]  ;;  %v118_v56 = vld [vmem:[%s2758_s1 + $0x280] sm:$0xff]  ;;  %v229_v4 = vld [vmem:[%s2758_s1 + $0x5f8] sm:$0xff] }
  0x44   :  { %423 = vmatmul.mubr.f32.vlgmr.msra.gmra.mrb[0].mxu1 %v2014_v27  ;;  %v1378_v35 = vpack.c.bf16 %v192_v20, %v186_v19  ;;  %v210_v58 = vld [vmem:[%s2758_s1 + $0x560] sm:$0xff]  ;;  %v124_v7 = vld [vmem:[%s2758_s1 + $0x2b0] sm:$0xff]  ;;  %v143_v19 = vld [vmem:[%s2758_s1 + $0x348] sm:$0xff] }
  0x45   :  { %1235 = vmatpush1.bf16.msra.mxu1 %v1234_v28  ;;  %428 = vmatprep.mubr.f32.mxu1 %v2060_v46  ;;  %v199_v28 = vld [vmem:[%s2758_s1 + $0x508] sm:$0xff]  ;;  %v2248_v8 = vld [vmem:[%s2759_s0 + $0x90] sm:$0xff]  ;;  %v1386_v9 = vpack.c.bf16 %v216_v61, %v210_v58  ;;  %v130_v11 = vld [vmem:[%s2758_s1 + $0x2e0] sm:$0xff] }
  0x46   :  { %1363 = vmatpush1.bf16.msra.mxu0 %v1362_v30  ;;  %1237 = vmatprep.subr.bf16.mxu1 %v1236_v31  ;;  %v205_v30 = vld [vmem:[%s2758_s1 + $0x538] sm:$0xff]  ;;  %v1250_v31 = vpack.c.bf16 %v94_v16, %v88_v15  ;;  %v2259_v15 = vld [vmem:[%s2759_s0 + $0xb0] sm:$0xff]  ;;  %v1388_v16 = vpack.c.bf16 %v229_v4, %v223_v2  ;;  %v235_v20 = vld [vmem:[%s2758_s1 + $0x628] sm:$0xff] }
  0x47   :  { %1365 = vmatprep.subr.bf16.mxu0 %v1364_v36  ;;  %v1252_v36 = vpack.c.bf16 %v107_v25, %v101_v24  ;;  %v1380_v40 = vpack.c.bf16 %v205_v30, %v199_v28  ;;  %v1262_v24 = vpack.c.bf16 %v130_v11, %v124_v7  ;;  %v2281_v25 = vld [vmem:[%s2759_s0 + $0xa8] sm:$0xff]  ;;  %v142_v32 = vld [vmem:[%s2758_s1 + $0x340] sm:$0xff]  ;;  %v240_v37 = vld [vmem:[%s2758_s1 + $0x650] sm:$0xff] }
  0x48   :  { %429 = vmatmul.mubr.f32.gmra.mrb[2].mxu1 %v2081_v57  ;;  %v167_v58 = vld [vmem:[%s2758_s1 + $0x408] sm:$0xff]  ;;  %v265_v61 = vld [vmem:[%s2758_s1 + $0x718] sm:$0xff]  ;;  %v160_v2 = vld [vmem:[%s2758_s1 + $0x3d0] sm:$0xff] }
  0x49   :  { %1239 = vmatpush1.bf16.msra.mxu1 %v1238_v43  ;;  %434 = vmatprep.mubr.f32.mxu1 %v2098_v62  ;;  %v119_v43 = vld [vmem:[%s2758_s1 + $0x288] sm:$0xff]  ;;  %v166_v4 = vld [vmem:[%s2758_s1 + $0x400] sm:$0xff]  ;;  %v173_v11 = vld [vmem:[%s2758_s1 + $0x438] sm:$0xff] }
  0x4a   :  { %1367 = vmatpush1.bf16.msra.mxu0 %v1366_v47  ;;  %1241 = vmatprep.subr.bf16.mxu1 %v1240_v48  ;;  %v211_v47 = vld [vmem:[%s2758_s1 + $0x568] sm:$0xff]  ;;  %v217_v48 = vld [vmem:[%s2758_s1 + $0x598] sm:$0xff]  ;;  %v1256_v55 = vpack.c.bf16 %v119_v43, %v113_v41 }
  0x4b   :  { %1369 = vmatprep.subr.bf16.mxu0 %v1368_v54  ;;  %v1382_v54 = vpack.c.bf16 %v204_v39, %v198_v38  ;;  %v149_v38 = vld [vmem:[%s2758_s1 + $0x378] sm:$0xff]  ;;  %v155_v39 = vld [vmem:[%s2758_s1 + $0x3a8] sm:$0xff] }
  0x4c   :  { %435 = vmatmul.mubr.f32.gmra.mrb[4].mxu1 %v2109_v5  ;;  %v253_v41 = vld [vmem:[%s2758_s1 + $0x6b8] sm:$0xff] }
  0x4d   :  { %1243 = vmatpush1.bf16.msra.mxu1 %v1242_v60  ;;  %440 = vmatprep.mubr.f32.mxu1 %v2131_v12  ;;  %v1384_v60 = vpack.c.bf16 %v217_v48, %v211_v47  ;;  %v148_v48 = vld [vmem:[%s2758_s1 + $0x370] sm:$0xff] }
  0x4e   :  { %1371 = vmatpush1.bf16.msra.mxu0 %v1370_v63  ;;  %1245 = vmatprep.subr.bf16.mxu1 %v1244_v1  ;;  %v125_v63 = vld [vmem:[%s2758_s1 + $0x2b8] sm:$0xff]  ;;  %v131_v1 = vld [vmem:[%s2758_s1 + $0x2e8] sm:$0xff] }
  0x4f   :  { %1373 = vmatprep.subr.bf16.mxu0 %v1372_v6  ;;  %v1258_v6 = vpack.c.bf16 %v118_v56, %v112_v52  ;;  %v1260_v10 = vpack.c.bf16 %v131_v1, %v125_v63  ;;  %v1268_v52 = vpack.c.bf16 %v155_v39, %v149_v38  ;;  %v161_v56 = vld [vmem:[%s2758_s1 + $0x3d8] sm:$0xff] }
  0x50   :  { %441 = vmatmul.mubr.f32.gmra.mrb[6].mxu1 %v2149_v21 }
  0x51   :  { %1247 = vmatpush1.bf16.msra.mxu1 %v1246_v13  ;;  %446 = vmatprep.mubr.f32.mxu1 %v2160_v26  ;;  %v222_v13 = vld [vmem:[%s2758_s1 + $0x5c0] sm:$0xff] }
  0x52   :  { %1375 = vmatpush1.bf16.msra.mxu0 %v1374_v17  ;;  %1249 = vmatprep.subr.bf16.mxu1 %v1248_v18  ;;  %v228_v17 = vld [vmem:[%s2758_s1 + $0x5f0] sm:$0xff]  ;;  %v137_v18 = vld [vmem:[%s2758_s1 + $0x318] sm:$0xff] }
  0x53   :  { %1377 = vmatprep.subr.bf16.mxu0 %v1376_v23  ;;  %v241_v23 = vld [vmem:[%s2758_s1 + $0x658] sm:$0xff]  ;;  %v1390_v28 = vpack.c.bf16 %v228_v17, %v222_v13  ;;  %v1264_v30 = vpack.c.bf16 %v143_v19, %v137_v18  ;;  %v179_v13 = vld [vmem:[%s2758_s1 + $0x468] sm:$0xff]  ;;  %v1274_v18 = vpack.c.bf16 %v166_v4, %v160_v2  ;;  %v294_v2 = vld [vmem:[%s2758_s1 + $0x800] sm:$0xff] }
  0x54   :  { %447 = vmatmul.mubr.f32.gmra.mrb[8].mxu1 %v2176_v34  ;;  %v277_v17 = vld [vmem:[%s2758_s1 + $0x778] sm:$0xff]  ;;  %v300_v4 = vld [vmem:[%s2758_s1 + $0x830] sm:$0xff] }
  0x55   :  { %1251 = vmatpush1.bf16.msra.mxu1 %v1250_v31  ;;  %452 = vmatprep.mubr.f32.mxu1 %v2196_v44  ;;  %v136_v31 = vld [vmem:[%s2758_s1 + $0x310] sm:$0xff] }
  0x56   :  { %1379 = vmatpush1.bf16.msra.mxu0 %v1378_v35  ;;  %1253 = vmatprep.subr.bf16.mxu1 %v1252_v36  ;;  %v1392_v35 = vpack.c.bf16 %v241_v23, %v235_v20  ;;  %v234_v36 = vld [vmem:[%s2758_s1 + $0x620] sm:$0xff]  ;;  %v1266_v43 = vpack.c.bf16 %v142_v32, %v136_v31  ;;  %v172_v20 = vld [vmem:[%s2758_s1 + $0x430] sm:$0xff]  ;;  %v185_v32 = vld [vmem:[%s2758_s1 + $0x498] sm:$0xff] }
  0x57   :  { %1381 = vmatprep.subr.bf16.mxu0 %v1380_v40  ;;  %v247_v40 = vld [vmem:[%s2758_s1 + $0x688] sm:$0xff]  ;;  %v1394_v47 = vpack.c.bf16 %v240_v37, %v234_v36  ;;  %v178_v23 = vld [vmem:[%s2758_s1 + $0x460] sm:$0xff]  ;;  %v276_v31 = vld [vmem:[%s2758_s1 + $0x770] sm:$0xff] }
  0x58   :  { %453 = vmatmul.mubr.f32.gmra.mrb[10].mxu1 %v2212_v53  ;;  %v283_v36 = vld [vmem:[%s2758_s1 + $0x7a8] sm:$0xff]  ;;  %v289_v37 = vld [vmem:[%s2758_s1 + $0x7d8] sm:$0xff]  ;;  %v1278_v38 = vpack.c.bf16 %v178_v23, %v172_v20  ;;  %v306_v20 = vld [vmem:[%s2758_s1 + $0x860] sm:$0xff] }
  0x59   :  { %1255 = vmatpush1.bf16.msra.mxu1 %v1254_v50  ;;  %458 = vmatprep.mubr.f32.mxu1 %v2223_v59  ;;  %v154_v50 = vld [vmem:[%s2758_s1 + $0x3a0] sm:$0xff]  ;;  %v312_v23 = vld [vmem:[%s2758_s1 + $0x890] sm:$0xff] }
  0x5a   :  { %1383 = vmatpush1.bf16.msra.mxu0 %v1382_v54  ;;  %1257 = vmatprep.subr.bf16.mxu1 %v1256_v55  ;;  %v1396_v54 = vpack.c.bf16 %v253_v41, %v247_v40  ;;  %v246_v55 = vld [vmem:[%s2758_s1 + $0x680] sm:$0xff]  ;;  %v1270_v63 = vpack.c.bf16 %v154_v50, %v148_v48  ;;  %v184_v40 = vld [vmem:[%s2758_s1 + $0x490] sm:$0xff] }
  0x5b   :  { %1385 = vmatprep.subr.bf16.mxu0 %v1384_v60  ;;  %v259_v60 = vld [vmem:[%s2758_s1 + $0x6e8] sm:$0xff]  ;;  %v190_v41 = vld [vmem:[%s2758_s1 + $0x4c0] sm:$0xff]  ;;  %v288_v50 = vld [vmem:[%s2758_s1 + $0x7d0] sm:$0xff] }
  0x5c   :  { %459 = vmatmul.mubr.f32.gmra.mrb[12].mxu1 %v2248_v8  ;;  %v1400_v7 = vpack.c.bf16 %v265_v61, %v259_v60  ;;  %v282_v48 = vld [vmem:[%s2758_s1 + $0x7a0] sm:$0xff]  ;;  %v196_v60 = vld [vmem:[%s2758_s1 + $0x4f0] sm:$0xff] }
  0x5d   :  { %1259 = vmatpush1.bf16.msra.mxu1 %v1258_v6  ;;  %464 = vmatprep.mubr.f32.mxu1 %v2259_v15  ;;  %v1272_v6 = vpack.c.bf16 %v167_v58, %v161_v56  ;;  %v1282_v56 = vpack.c.bf16 %v190_v41, %v184_v40  ;;  %v1410_v58 = vpack.c.bf16 %v288_v50, %v282_v48  ;;  %v202_v61 = vld [vmem:[%s2758_s1 + $0x520] sm:$0xff]  ;;  %v324_v41 = vld [vmem:[%s2758_s1 + $0x8f0] sm:$0xff] }
  0x5e   :  { %1387 = vmatpush1.bf16.msra.mxu0 %v1386_v9  ;;  %1261 = vmatprep.subr.bf16.mxu1 %v1260_v10  ;;  %v258_v9 = vld [vmem:[%s2758_s1 + $0x6e0] sm:$0xff]  ;;  %v264_v10 = vld [vmem:[%s2758_s1 + $0x710] sm:$0xff] }
  0x5f   :  { %1389 = vmatprep.subr.bf16.mxu0 %v1388_v16  ;;  %v271_v16 = vld [vmem:[%s2758_s1 + $0x748] sm:$0xff]  ;;  %v1402_v19 = vpack.c.bf16 %v264_v10, %v258_v9  ;;  %v313_v10 = vld [vmem:[%s2758_s1 + $0x898] sm:$0xff]  ;;  %v318_v40 = vld [vmem:[%s2758_s1 + $0x8c0] sm:$0xff] }
  0x60   :  { %465 = vmatmul.mubr.f32.gmra.mrb[14].mxu1 %v2281_v25  ;;  %v307_v9 = vld [vmem:[%s2758_s1 + $0x868] sm:$0xff]  ;;  %v1422_v50 = vpack.c.bf16 %v324_v41, %v318_v40 }
  0x61   :  { %1263 = vmatpush1.bf16.msra.mxu1 %v1262_v24  ;;  %648 = vmatprep.mubr.f32.mxu1 %v1854_v22  ;;  %v252_v22 = vld [vmem:[%s2758_s1 + $0x6b0] sm:$0xff]  ;;  %v1276_v24 = vpack.c.bf16 %v179_v13, %v173_v11  ;;  %v1286_v11 = vpack.c.bf16 %v202_v61, %v196_v60  ;;  %v1414_v13 = vpack.c.bf16 %v300_v4, %v294_v2  ;;  %v250_v61 = vld [vmem:[%s2758_s1 + $0x6a0] sm:$0xff]  ;;  %v263_v2 = vld [vmem:[%s2758_s1 + $0x708] sm:$0xff] }
  0x62   :  { %1391 = vmatpush1.bf16.msra.mxu0 %v1390_v28  ;;  %1265 = vmatprep.subr.bf16.mxu1 %v1264_v30  ;;  %v1398_v1 = vpack.c.bf16 %v252_v22, %v246_v55  ;;  %v1404_v28 = vpack.c.bf16 %v277_v17, %v271_v16  ;;  %v270_v30 = vld [vmem:[%s2758_s1 + $0x740] sm:$0xff]  ;;  %v295_v55 = vld [vmem:[%s2758_s1 + $0x808] sm:$0xff]  ;;  %v301_v22 = vld [vmem:[%s2758_s1 + $0x838] sm:$0xff] }
  0x63   :  { %1393 = vmatprep.subr.bf16.mxu0 %v1392_v35  ;;  %v191_v35 = vld [vmem:[%s2758_s1 + $0x4c8] sm:$0xff]  ;;  %v1406_v39 = vpack.c.bf16 %v276_v31, %v270_v30  ;;  %v208_v16 = vld [vmem:[%s2758_s1 + $0x550] sm:$0xff]  ;;  %v214_v17 = vld [vmem:[%s2758_s1 + $0x580] sm:$0xff] }
  0x64   :  { %v319_v30 = vld [vmem:[%s2758_s1 + $0x8c8] sm:$0xff]  ;;  %v325_v31 = vld [vmem:[%s2758_s1 + $0x8f8] sm:$0xff]  ;;  %v244_v60 = vld [vmem:[%s2758_s1 + $0x670] sm:$0xff] }
  0x65   :  { %875 = vmatmul.mubr.f32.vlgmr.msra.gmra.mrb[16].mxu0 %v2014_v27  ;;  %1267 = vmatpush1.bf16.msra.mxu1 %v1266_v43  ;;  %v1280_v43 = vpack.c.bf16 %v191_v35, %v185_v32  ;;  %v1290_v32 = vpack.c.bf16 %v214_v17, %v208_v16  ;;  %v1418_v35 = vpack.c.bf16 %v312_v23, %v306_v20  ;;  %v286_v17 = vld [vmem:[%s2758_s1 + $0x7c0] sm:$0xff] }
  0x66   :  { %1395 = vmatpush1.bf16.msra.mxu0 %v1394_v47  ;;  %880 = vmatprep.mubr.f32.mxu0 %v2060_v46  ;;  %v1408_v47 = vpack.c.bf16 %v289_v37, %v283_v36  ;;  %v220_v36 = vld [vmem:[%s2758_s1 + $0x5b0] sm:$0xff]  ;;  %v226_v37 = vld [vmem:[%s2758_s1 + $0x5e0] sm:$0xff]  ;;  %v1302_v4 = vpack.c.bf16 %v250_v61, %v244_v60 }
  0x67   :  { %1269 = vmatprep.subr.bf16.mxu1 %v1268_v52  ;;  %1397 = vmatprep.subr.bf16.mxu0 %v1396_v54  ;;  %v197_v52 = vld [vmem:[%s2758_s1 + $0x4f8] sm:$0xff]  ;;  %v203_v54 = vld [vmem:[%s2758_s1 + $0x528] sm:$0xff]  ;;  %v1294_v48 = vpack.c.bf16 %v226_v37, %v220_v36  ;;  %v298_v23 = vld [vmem:[%s2758_s1 + $0x820] sm:$0xff] }
  0x68   :  { %v322_v37 = vld [vmem:[%s2758_s1 + $0x8e0] sm:$0xff] }
  0x69   :  { %881 = vmatmul.mubr.f32.gmra.mrb[18].mxu0 %v2081_v57  ;;  %1271 = vmatpush1.bf16.msra.mxu1 %v1270_v63  ;;  %v1284_v63 = vpack.c.bf16 %v203_v54, %v197_v52  ;;  %v232_v52 = vld [vmem:[%s2758_s1 + $0x610] sm:$0xff]  ;;  %v238_v54 = vld [vmem:[%s2758_s1 + $0x640] sm:$0xff] }
  0x6a   :  { %1399 = vmatpush1.bf16.msra.mxu0 %v1398_v1  ;;  %886 = vmatprep.mubr.f32.mxu0 %v2098_v62  ;;  %v1412_v1 = vpack.c.bf16 %v301_v22, %v295_v55  ;;  %v245_v22 = vld [vmem:[%s2758_s1 + $0x678] sm:$0xff] }
  0x6b   :  { %1273 = vmatprep.subr.bf16.mxu1 %v1272_v6  ;;  %1401 = vmatprep.subr.bf16.mxu0 %v1400_v7  ;;  %v209_v6 = vld [vmem:[%s2758_s1 + $0x558] sm:$0xff]  ;;  %v215_v7 = vld [vmem:[%s2758_s1 + $0x588] sm:$0xff] }
  0x6d   :  { %887 = vmatmul.mubr.f32.gmra.mrb[20].mxu0 %v2109_v5  ;;  %1275 = vmatpush1.bf16.msra.mxu1 %v1274_v18  ;;  %v1288_v18 = vpack.c.bf16 %v215_v7, %v209_v6  ;;  %v262_v6 = vld [vmem:[%s2758_s1 + $0x700] sm:$0xff] }
  0x6e   :  { %1403 = vmatpush1.bf16.msra.mxu0 %v1402_v19  ;;  %892 = vmatprep.mubr.f32.mxu0 %v2131_v12  ;;  %v1416_v19 = vpack.c.bf16 %v313_v10, %v307_v9  ;;  %v274_v10 = vld [vmem:[%s2758_s1 + $0x760] sm:$0xff] }
  0x6f   :  { %1277 = vmatprep.subr.bf16.mxu1 %v1276_v24  ;;  %1405 = vmatprep.subr.bf16.mxu0 %v1404_v28  ;;  %v221_v24 = vld [vmem:[%s2758_s1 + $0x5b8] sm:$0xff]  ;;  %v227_v28 = vld [vmem:[%s2758_s1 + $0x5e8] sm:$0xff] }
  0x71   :  { %893 = vmatmul.mubr.f32.gmra.mrb[22].mxu0 %v2149_v21  ;;  %1279 = vmatpush1.bf16.msra.mxu1 %v1278_v38  ;;  %v1292_v38 = vpack.c.bf16 %v227_v28, %v221_v24  ;;  %v305_v28 = vld [vmem:[%s2758_s1 + $0x858] sm:$0xff] }
  0x72   :  { %1407 = vmatpush1.bf16.msra.mxu0 %v1406_v39  ;;  %898 = vmatprep.mubr.f32.mxu0 %v2160_v26  ;;  %v1420_v39 = vpack.c.bf16 %v325_v31, %v319_v30  ;;  %v310_v31 = vld [vmem:[%s2758_s1 + $0x880] sm:$0xff] }
  0x73   :  { %1281 = vmatprep.subr.bf16.mxu1 %v1280_v43  ;;  %1409 = vmatprep.subr.bf16.mxu0 %v1408_v47  ;;  %v233_v43 = vld [vmem:[%s2758_s1 + $0x618] sm:$0xff]  ;;  %v239_v47 = vld [vmem:[%s2758_s1 + $0x648] sm:$0xff] }
  0x74   :  { %v1296_v55 = vpack.c.bf16 %v239_v47, %v233_v43 }
  0x75   :  { %899 = vmatmul.mubr.f32.gmra.mrb[24].mxu0 %v2176_v34  ;;  %1283 = vmatpush1.bf16.msra.mxu1 %v1282_v56  ;;  %v251_v56 = vld [vmem:[%s2758_s1 + $0x6a8] sm:$0xff] }
  0x76   :  { %1411 = vmatpush1.bf16.msra.mxu0 %v1410_v58  ;;  %904 = vmatprep.mubr.f32.mxu0 %v2196_v44  ;;  %v1298_v58 = vpack.c.bf16 %v238_v54, %v232_v52 }
  0x77   :  { %1285 = vmatprep.subr.bf16.mxu1 %v1284_v63  ;;  %1413 = vmatprep.subr.bf16.mxu0 %v1412_v1  ;;  %v1300_v63 = vpack.c.bf16 %v251_v56, %v245_v22  ;;  %v257_v1 = vld [vmem:[%s2758_s1 + $0x6d8] sm:$0xff] }
  0x78   :  { %v1304_v7 = vpack.c.bf16 %v263_v2, %v257_v1 }
  0x79   :  { %905 = vmatmul.mubr.f32.gmra.mrb[26].mxu0 %v2212_v53  ;;  %1287 = vmatpush1.bf16.msra.mxu1 %v1286_v11 }
  0x7a   :  { %1415 = vmatpush1.bf16.msra.mxu0 %v1414_v13  ;;  %910 = vmatprep.mubr.f32.mxu0 %v2223_v59  ;;  %v281_v13 = vld [vmem:[%s2758_s1 + $0x798] sm:$0xff] }
  0x7b   :  { %1289 = vmatprep.subr.bf16.mxu1 %v1288_v18  ;;  %1417 = vmatprep.subr.bf16.mxu0 %v1416_v19  ;;  %v293_v19 = vld [vmem:[%s2758_s1 + $0x7f8] sm:$0xff] }
  0x7d   :  { %911 = vmatmul.mubr.f32.gmra.mrb[28].mxu0 %v2248_v8  ;;  %1291 = vmatpush1.bf16.msra.mxu1 %v1290_v32 }
  0x7e   :  { %1419 = vmatpush1.bf16.msra.mxu0 %v1418_v35  ;;  %916 = vmatprep.mubr.f32.mxu0 %v2259_v15  ;;  %v317_v35 = vld [vmem:[%s2758_s1 + $0x8b8] sm:$0xff] }
  0x7f   :  { %1293 = vmatprep.subr.bf16.mxu1 %v1292_v38  ;;  %1421 = vmatprep.subr.bf16.mxu0 %v1420_v39 }
  0x81   :  { %917 = vmatmul.mubr.f32.gmra.mrb[30].mxu0 %v2281_v25  ;;  %1295 = vmatpush1.bf16.msra.mxu1 %v1294_v48 }
  0x82   :  { %1423 = vmatpush1.bf16.msra.mxu0 %v1422_v50  ;;  %987 = vmatprep.mubr.f32.mxu0 %v1522_v3 }
  0x83   :  { %1297 = vmatprep.subr.bf16.mxu1 %v1296_v55 }
  0x84   :  { %649 = vmatmul.mubr.f32.vlgmr.msra.gmra.mrb[16].mxu1 %v2014_v27  ;;  %v256_v27 = vld [vmem:[%s2758_s1 + $0x6d0] sm:$0xff] }
  0x85   :  { %988 = vmatmul.mubr.f32.vlgmr.msra.gmra.mrb[16].mxu0 %v1775_v49  ;;  %1299 = vmatpush1.bf16.msra.mxu1 %v1298_v58  ;;  %v269_v49 = vld [vmem:[%s2758_s1 + $0x738] sm:$0xff]  ;;  %v1306_v9 = vpack.c.bf16 %v262_v6, %v256_v27 }
  0x86   :  { %654 = vmatprep.mubr.f32.mxu1 %v2060_v46  ;;  %993 = vmatprep.mubr.f32.mxu0 %v1522_v3  ;;  %v275_v46 = vld [vmem:[%s2758_s1 + $0x768] sm:$0xff] }
  0x87   :  { %1301 = vmatprep.subr.bf16.mxu1 %v1300_v63  ;;  %v1308_v11 = vpack.c.bf16 %v275_v46, %v269_v49 }
  0x88   :  { %655 = vmatmul.mubr.f32.gmra.mrb[18].mxu1 %v2081_v57  ;;  %v268_v57 = vld [vmem:[%s2758_s1 + $0x730] sm:$0xff] }
  0x89   :  { %994 = vmatmul.mubr.f32.gmra.mrb[18].mxu0 %v1878_v33  ;;  %1303 = vmatpush1.bf16.msra.mxu1 %v1302_v4  ;;  %v1310_v16 = vpack.c.bf16 %v274_v10, %v268_v57 }
  0x8a   :  { %660 = vmatprep.mubr.f32.mxu1 %v2098_v62  ;;  %999 = vmatprep.mubr.f32.mxu0 %v1522_v3  ;;  %v287_v62 = vld [vmem:[%s2758_s1 + $0x7c8] sm:$0xff] }
  0x8b   :  { %1305 = vmatprep.subr.bf16.mxu1 %v1304_v7  ;;  %v1312_v18 = vpack.c.bf16 %v287_v62, %v281_v13 }
  0x8c   :  { %661 = vmatmul.mubr.f32.gmra.mrb[20].mxu1 %v2109_v5  ;;  %v280_v5 = vld [vmem:[%s2758_s1 + $0x790] sm:$0xff] }
  0x8d   :  { %1000 = vmatmul.mubr.f32.gmra.mrb[20].mxu0 %v1900_v42  ;;  %1307 = vmatpush1.bf16.msra.mxu1 %v1306_v9  ;;  %v1314_v20 = vpack.c.bf16 %v286_v17, %v280_v5 }
  0x8e   :  { %666 = vmatprep.mubr.f32.mxu1 %v2131_v12  ;;  %1005 = vmatprep.mubr.f32.mxu0 %v1522_v3  ;;  %v299_v12 = vld [vmem:[%s2758_s1 + $0x828] sm:$0xff] }
  0x8f   :  { %1309 = vmatprep.subr.bf16.mxu1 %v1308_v11  ;;  %v1316_v24 = vpack.c.bf16 %v299_v12, %v293_v19 }
  0x90   :  { %667 = vmatmul.mubr.f32.gmra.mrb[22].mxu1 %v2149_v21  ;;  %v292_v21 = vld [vmem:[%s2758_s1 + $0x7f0] sm:$0xff] }
  0x91   :  { %1006 = vmatmul.mubr.f32.gmra.mrb[22].mxu0 %v1922_v51  ;;  %1311 = vmatpush1.bf16.msra.mxu1 %v1310_v16  ;;  %v1318_v30 = vpack.c.bf16 %v298_v23, %v292_v21 }
  0x92   :  { %672 = vmatprep.mubr.f32.mxu1 %v2160_v26  ;;  %1011 = vmatprep.mubr.f32.mxu0 %v1522_v3  ;;  %v311_v26 = vld [vmem:[%s2758_s1 + $0x888] sm:$0xff] }
  0x93   :  { %1313 = vmatprep.subr.bf16.mxu1 %v1312_v18  ;;  %v1320_v32 = vpack.c.bf16 %v311_v26, %v305_v28 }
  0x94   :  { %673 = vmatmul.mubr.f32.gmra.mrb[24].mxu1 %v2176_v34  ;;  %v304_v34 = vld [vmem:[%s2758_s1 + $0x850] sm:$0xff] }
  0x95   :  { %1012 = vmatmul.mubr.f32.gmra.mrb[24].mxu0 %v1953_v0  ;;  %1315 = vmatpush1.bf16.msra.mxu1 %v1314_v20  ;;  %v1322_v36 = vpack.c.bf16 %v310_v31, %v304_v34 }
  0x96   :  { %678 = vmatprep.mubr.f32.mxu1 %v2196_v44  ;;  %1017 = vmatprep.mubr.f32.mxu0 %v1522_v3  ;;  %v323_v44 = vld [vmem:[%s2758_s1 + $0x8e8] sm:$0xff] }
  0x97   :  { %1317 = vmatprep.subr.bf16.mxu1 %v1316_v24  ;;  %v1324_v38 = vpack.c.bf16 %v323_v44, %v317_v35 }
  0x98   :  { %679 = vmatmul.mubr.f32.gmra.mrb[26].mxu1 %v2212_v53  ;;  %v316_v53 = vld [vmem:[%s2758_s1 + $0x8b0] sm:$0xff] }
  0x99   :  { %1018 = vmatmul.mubr.f32.gmra.mrb[26].mxu0 %v1984_v14  ;;  %1319 = vmatpush1.bf16.msra.mxu1 %v1318_v30  ;;  %v1326_v39 = vpack.c.bf16 %v322_v37, %v316_v53 }
  0x9a   :  { %684 = vmatprep.mubr.f32.mxu1 %v2223_v59  ;;  %1023 = vmatprep.mubr.f32.mxu0 %v1522_v3  ;;  %v1521_v59 = vld [vmem:[%s2759_s0 + $0x10] sm:$0xff] }
  0x9b   :  { %1321 = vmatprep.subr.bf16.mxu1 %v1320_v32 }
  0x9c   :  { %685 = vmatmul.mubr.f32.gmra.mrb[28].mxu1 %v2248_v8 }
  0x9d   :  { %1024 = vmatmul.mubr.f32.gmra.mrb[28].mxu0 %v2020_v29  ;;  %1323 = vmatpush1.bf16.msra.mxu1 %v1322_v36 }
  0x9e   :  { %690 = vmatprep.mubr.f32.mxu1 %v2259_v15  ;;  %1029 = vmatprep.mubr.f32.mxu0 %v1522_v3 }
  0x9f   :  { %1325 = vmatprep.subr.bf16.mxu1 %v1324_v38 }
  0xa0   :  { %691 = vmatmul.mubr.f32.gmra.mrb[30].mxu1 %v2281_v25  ;;  %v328_v25 = vlaneseq }
  0xa1   :  { %1030 = vmatmul.mubr.f32.gmra.mrb[30].mxu0 %v2055_v45  ;;  %1327 = vmatpush1.bf16.msra.mxu1 %v1326_v39 }
  0xa2   :  { %761 = vmatprep.mubr.f32.mxu1 %v1522_v3  ;;  %v2625_v41 = vshrl.u32 %v328_v25, 7 }
  0xa4   :  { %762 = vmatmul.mubr.f32.vlgmr.msra.gmra.mrb[16].mxu1 %v1521_v59  ;;  %v330_v47 = vsub.s32 0, %v2625_v41 }
  0xa5   :  { %767 = vmatprep.mubr.f32.mxu1 %v1522_v3 }
  0xa8   :  { %768 = vmatmul.mubr.f32.gmra.mrb[18].mxu1 %v1878_v33 }
  0xa9   :  { %773 = vmatprep.mubr.f32.mxu1 %v1522_v3 }
  0xac   :  { %774 = vmatmul.mubr.f32.gmra.mrb[20].mxu1 %v1900_v42 }
  0xad   :  { %779 = vmatprep.mubr.f32.mxu1 %v1522_v3 }
  0xb0   :  { %780 = vmatmul.mubr.f32.gmra.mrb[22].mxu1 %v1922_v51 }
  0xb1   :  { %785 = vmatprep.mubr.f32.mxu1 %v1522_v3 }
  0xb4   :  { %786 = vmatmul.mubr.f32.gmra.mrb[24].mxu1 %v1953_v0 }
  0xb5   :  { %791 = vmatprep.mubr.f32.mxu1 %v1522_v3 }
  0xb8   :  { %792 = vmatmul.mubr.f32.gmra.mrb[26].mxu1 %v1984_v14 }
  0xb9   :  { %797 = vmatprep.mubr.f32.mxu1 %v1522_v3 }
  0xbc   :  { %798 = vmatmul.mubr.f32.gmra.mrb[28].mxu1 %v2020_v29  ;;  %v334_v29 = vsub.s32 1, %v2625_v41 }
  0xbd   :  { %803 = vmatprep.mubr.f32.mxu1 %v1522_v3  ;;  %v2631_v3 = vld [vmem:[%s2760_s2] sm:$0x3f] }
  0xbe   :  { %v331_v50 = vrot.slane %v2631_v3, %v330_v47  ;;  %v335_v54 = vrot.slane %v2631_v3, %v334_v29 }
  0xc0   :  { %804 = vmatmul.mubr.f32.gmra.mrb[30].mxu1 %v2055_v45 }
  0xf8   :  { %v537_v33 = vpop.f32.mrb[0].mxu0 }
  0xf9   :  { %v539_v42 = vpop.f32.mrb[1].mxu0 }
  0xfc   :  { %v543_v8 = vpop.f32.mrb[2].mxu0 }
  0xfd   :  { %v545_v51 = vpop.f32.mrb[3].mxu0 }
 0x100   :  { %v549_v15 = vpop.f32.mrb[4].mxu0 }
 0x101   :  { %v551_v40 = vpop.f32.mrb[5].mxu0 }
 0x104   :  { %v555_v0 = vpop.f32.mrb[6].mxu0 }
 0x105   :  { %v557_v43 = vpop.f32.mrb[7].mxu0 }
 0x108   :  { %v561_v14 = vpop.f32.mrb[8].mxu0 }
 0x109   :  { %v563_v48 = vpop.f32.mrb[9].mxu0 }
 0x10c   :  { %v567_v45 = vpop.f32.mrb[10].mxu0 }
 0x10d   :  { %v569_v52 = vpop.f32.mrb[11].mxu0 }
 0x110   :  { %v573_v22 = vpop.f32.mrb[12].mxu0 }
 0x111   :  { %v575_v60 = vpop.f32.mrb[13].mxu0 }
 0x114   :  { %v579_v4 = vpop.f32.mrb[14].mxu0 }
 0x115   :  { %v581_v7 = vpop.f32.mrb[15].mxu0 }
 0x117   :  { %v424_v55 = vpop.f32.mrb[0].mxu1 }
 0x118   :  { %v425_v56 = vadd.f32 %v424_v55, %v331_v50  ;;  %v426_v58 = vpop.f32.mrb[1].mxu1 }
 0x119   :  { %v427_v61 = vadd.f32 %v426_v58, %v335_v54 }
 0x11a   :  { %v2636_v63 = vadd.f32 %v537_v33, %v425_v56 }
 0x11b   :  { %v540_v1 = vadd.f32 %v539_v42, %v427_v61  ;;  %v430_v2 = vpop.f32.mrb[2].mxu1 }
 0x11c   :  { %v431_v27 = vadd.f32 %v430_v2, %v331_v50  ;;  %v432_v6 = vpop.f32.mrb[3].mxu1 }
 0x11d   :  { %v433_v49 = vadd.f32 %v432_v6, %v335_v54  ;;  %v1037_v29 = vmax.f32 %v540_v1, 0.0 }
 0x11e   :  { %v2638_v46 = vadd.f32 %v543_v8, %v431_v27 }
 0x11f   :  { %v546_v9 = vadd.f32 %v545_v51, %v433_v49  ;;  %v436_v57 = vpop.f32.mrb[4].mxu1 }
 0x120   :  { %v437_v10 = vadd.f32 %v436_v57, %v331_v50  ;;  %v438_v11 = vpop.f32.mrb[5].mxu1 }
 0x121   :  { %v439_v13 = vadd.f32 %v438_v11, %v335_v54 }
 0x122   :  { %v2640_v62 = vadd.f32 %v549_v15, %v437_v10 }
 0x123   :  { %v552_v16 = vadd.f32 %v551_v40, %v439_v13  ;;  %v442_v5 = vpop.f32.mrb[6].mxu1 }
 0x124   :  { %v443_v17 = vadd.f32 %v442_v5, %v331_v50  ;;  %v444_v18 = vpop.f32.mrb[7].mxu1 }
 0x125   :  { %v445_v19 = vadd.f32 %v444_v18, %v335_v54 }
 0x126   :  { %v2642_v12 = vadd.f32 %v555_v0, %v443_v17  ;;  %v346_v0 = vsub.s32 4, %v2625_v41 }
 0x127   :  { %v558_v20 = vadd.f32 %v557_v43, %v445_v19  ;;  %v448_v21 = vpop.f32.mrb[8].mxu1 }
 0x128   :  { %v449_v23 = vadd.f32 %v448_v21, %v331_v50  ;;  %v450_v24 = vpop.f32.mrb[9].mxu1  ;;  %v347_v43 = vrot.slane %v2631_v3, %v346_v0 }
 0x129   :  { %v451_v28 = vadd.f32 %v450_v24, %v335_v54  ;;  %v1055_v1 = vmax.f32 %v558_v20, 0.0  ;;  %v338_v20 = vsub.s32 2, %v2625_v41 }
 0x12a   :  { %v2644_v26 = vadd.f32 %v561_v14, %v449_v23 }
 0x12b   :  { %v564_v30 = vadd.f32 %v563_v48, %v451_v28  ;;  %v454_v34 = vpop.f32.mrb[10].mxu1 }
 0x12c   :  { %v455_v31 = vadd.f32 %v454_v34, %v331_v50  ;;  %v456_v32 = vpop.f32.mrb[11].mxu1 }
 0x12d   :  { %v457_v35 = vadd.f32 %v456_v32, %v335_v54 }
 0x12e   :  { %v2646_v44 = vadd.f32 %v567_v45, %v455_v31 }
 0x12f   :  { %v570_v36 = vadd.f32 %v569_v52, %v457_v35  ;;  %v460_v53 = vpop.f32.mrb[12].mxu1 }
 0x130   :  { %v461_v37 = vadd.f32 %v460_v53, %v331_v50  ;;  %v462_v38 = vpop.f32.mrb[13].mxu1 }
 0x131   :  { %v463_v39 = vadd.f32 %v462_v38, %v335_v54  ;;  %v1067_v28 = vmax.f32 %v570_v36, 0.0 }
 0x132   :  { %v2648_v59 = vadd.f32 %v573_v22, %v461_v37  ;;  %v342_v37 = vsub.s32 3, %v2625_v41 }
 0x133   :  { %v576_v33 = vadd.f32 %v575_v60, %v463_v39  ;;  %v466_v42 = vpop.f32.mrb[14].mxu1 }
 0x134   :  { %v467_v8 = vadd.f32 %v466_v42, %v331_v50  ;;  %v468_v51 = vpop.f32.mrb[15].mxu1  ;;  %v1043_v50 = vmax.f32 %v546_v9, 0.0  ;;  %v1061_v9 = vmax.f32 %v564_v30, 0.0 }
 0x135   :  { %v469_v15 = vadd.f32 %v468_v51, %v335_v54  ;;  %v1073_v39 = vmax.f32 %v576_v33, 0.0  ;;  %v2676_v51 = vrot.slane %v2631_v3, %v338_v20 }
 0x136   :  { %v2650_v25 = vadd.f32 %v579_v4, %v467_v8  ;;  %v1049_v4 = vmax.f32 %v552_v16, 0.0  ;;  %v350_v16 = vsub.s32 5, %v2625_v41  ;;  %v2684_v41 = vrot.slane %v2631_v3, %v342_v37 }
 0x137   :  { %v2652_v40 = vadd.f32 %v581_v7, %v469_v15 }
 0x138   :  { %v2673_v38 = vrot.slane %v2631_v3, %v350_v16 }
 0x139   :  { %v1079_v33 = vmax.f32 %v2652_v40, 0.0 }
 0x158   :  { %v989_v14 = vpop.f32.mrb[16].mxu0 }
 0x159   :  { %v1472_v47 = vadd.f32 %v989_v14, %v347_v43  ;;  %v991_v48 = vpop.f32.mrb[17].mxu0 }
 0x15b   :  { %v1040_v45 = vmax.f32 %v1472_v47, 0.0  ;;  %v1473_v47 = vadd.f32 %v991_v48, %v2673_v38  ;;  %v1036_v48 = vmax.f32 %v2636_v63, 0.0  ;;  %v1042_v63 = vmax.f32 %v2638_v46, 0.0 }
 0x15c   :  { %v995_v52 = vpop.f32.mrb[18].mxu0 }
 0x15d   :  { %v1085_v55 = vmax.f32 %v1037_v29, %v1040_v45  ;;  %v1474_v22 = vadd.f32 %v995_v52, %v347_v43  ;;  %v997_v56 = vpop.f32.mrb[19].mxu0 }
 0x15e   :  { %v1475_v3 = vadd.f32 %v997_v56, %v2673_v38 }
 0x15f   :  { %v1046_v58 = vmax.f32 %v1474_v22, 0.0 }
 0x160   :  { %v1001_v54 = vpop.f32.mrb[20].mxu0 }
 0x161   :  { %v1088_v60 = vmax.f32 %v1043_v50, %v1046_v58  ;;  %v1476_v61 = vadd.f32 %v1001_v54, %v347_v43  ;;  %v2656_v2 = vpop.f32.mrb[21].mxu0  ;;  %v1041_v58 = vmax.f32 %v1473_v47, 0.0 }
 0x162   :  { %v1477_v56 = vadd.f32 %v2656_v2, %v2673_v38 }
 0x163   :  { %v1052_v27 = vmax.f32 %v1476_v61, 0.0 }
 0x164   :  { %v1007_v6 = vpop.f32.mrb[22].mxu0 }
 0x165   :  { %v1091_v7 = vmax.f32 %v1049_v4, %v1052_v27  ;;  %v1478_v49 = vadd.f32 %v1007_v6, %v347_v43  ;;  %v2658_v57 = vpop.f32.mrb[23].mxu0 }
 0x166   :  { %v1479_v16 = vadd.f32 %v2658_v57, %v2673_v38  ;;  %v1054_v57 = vmax.f32 %v2642_v12, 0.0 }
 0x167   :  { %v1058_v10 = vmax.f32 %v1478_v49, 0.0 }
 0x168   :  { %v1013_v11 = vpop.f32.mrb[24].mxu0  ;;  %v1059_v37 = vmax.f32 %v1479_v16, 0.0  ;;  %v1078_v16 = vmax.f32 %v2650_v25, 0.0 }
 0x169   :  { %v1094_v13 = vmax.f32 %v1055_v1, %v1058_v10  ;;  %v1480_v5 = vadd.f32 %v1013_v11, %v347_v43  ;;  %v2660_v17 = vpop.f32.mrb[25].mxu0  ;;  %v1047_v1 = vmax.f32 %v1475_v3, 0.0 }
 0x16b   :  { %v1064_v18 = vmax.f32 %v1480_v5, 0.0 }
 0x16c   :  { %v1019_v19 = vpop.f32.mrb[26].mxu0 }
 0x16d   :  { %v1097_v21 = vmax.f32 %v1061_v9, %v1064_v18  ;;  %v1482_v23 = vadd.f32 %v1019_v19, %v347_v43  ;;  %v2662_v24 = vpop.f32.mrb[27].mxu0 }
 0x16f   :  { %v1109_v34 = vmax.f32 %v1085_v55, %v1097_v21  ;;  %v1070_v31 = vmax.f32 %v1482_v23, 0.0  ;;  %v1053_v23 = vmax.f32 %v1477_v56, 0.0 }
 0x170   :  { %v1025_v32 = vpop.f32.mrb[28].mxu0 }
 0x171   :  { %1121 = vst [vmem:[%s2761_s3 + $0x8] sm:$0xff] %v1109_v34  ;;  %v1100_v35 = vmax.f32 %v1067_v28, %v1070_v31  ;;  %v1484_v30 = vadd.f32 %v1025_v32, %v347_v43  ;;  %v2669_v53 = vpop.f32.mrb[29].mxu0  ;;  %v1048_v34 = vmax.f32 %v2640_v62, 0.0 }
 0x173   :  { %v1112_v36 = vmax.f32 %v1088_v60, %v1100_v35  ;;  %v1076_v42 = vmax.f32 %v1484_v30, 0.0 }
 0x174   :  { %v1031_v8 = vpop.f32.mrb[30].mxu0 }
 0x175   :  { %1124 = vst [vmem:[%s2761_s3 + $0x20] sm:$0xff] %v1112_v36  ;;  %v1103_v15 = vmax.f32 %v1073_v39, %v1076_v42  ;;  %v1486_v0 = vadd.f32 %v1031_v8, %v347_v43  ;;  %v2681_v14 = vpop.f32.mrb[31].mxu0  ;;  %v1481_v39 = vadd.f32 %v2660_v17, %v2673_v38 }
 0x177   :  { %v1115_v29 = vmax.f32 %v1091_v7, %v1103_v15  ;;  %v1082_v45 = vmax.f32 %v1486_v0, 0.0  ;;  %v763_v52 = vpop.f32.mrb[16].mxu1 }
 0x178   :  { %v1456_v55 = vadd.f32 %v763_v52, %v2676_v51  ;;  %v765_v22 = vpop.f32.mrb[17].mxu1 }
 0x179   :  { %1127 = vst [vmem:[%s2761_s3 + $0x38] sm:$0xff] %v1115_v29  ;;  %v1106_v43 = vmax.f32 %v1079_v33, %v1082_v45  ;;  %v1457_v50 = vadd.f32 %v765_v22, %v2684_v41  ;;  %v1065_v29 = vmax.f32 %v1481_v39, 0.0  ;;  %v1483_v45 = vadd.f32 %v2662_v24, %v2673_v38 }
 0x17a   :  { %v1038_v54 = vmax.f32 %v1456_v55, 0.0  ;;  %v1060_v55 = vmax.f32 %v2644_v26, 0.0  ;;  %v1066_v24 = vmax.f32 %v2646_v44, 0.0  ;;  %v1487_v44 = vadd.f32 %v2681_v14, %v2673_v38 }
 0x17b   :  { %v1118_v40 = vmax.f32 %v1094_v13, %v1106_v43  ;;  %v1039_v60 = vmax.f32 %v1457_v50, 0.0  ;;  %v769_v61 = vpop.f32.mrb[18].mxu1 }
 0x17c   :  { %v1086_v4 = vmax.f32 %v1038_v54, %v1041_v58  ;;  %v1458_v27 = vadd.f32 %v769_v61, %v2676_v51  ;;  %v771_v6 = vpop.f32.mrb[19].mxu1  ;;  %v1071_v54 = vmax.f32 %v1483_v45, 0.0 }
 0x17d   :  { %1130 = vst [vmem:[%s2761_s3 + $0x50] sm:$0xff] %v1118_v40  ;;  %v1084_v7 = vmax.f32 %v1036_v48, %v1039_v60  ;;  %v1459_v49 = vadd.f32 %v771_v6, %v2684_v41  ;;  %v1485_v48 = vadd.f32 %v2669_v53, %v2673_v38 }
 0x17e   :  { %v1044_v10 = vmax.f32 %v1458_v27, 0.0 }
 0x17f   :  { %v1045_v11 = vmax.f32 %v1459_v49, 0.0  ;;  %v775_v13 = vpop.f32.mrb[20].mxu1  ;;  %v1077_v56 = vmax.f32 %v1485_v48, 0.0 }
 0x180   :  { %v1089_v5 = vmax.f32 %v1044_v10, %v1047_v1  ;;  %v1460_v9 = vadd.f32 %v775_v13, %v2676_v51  ;;  %v777_v18 = vpop.f32.mrb[21].mxu1 }
 0x181   :  { %v1087_v19 = vmax.f32 %v1042_v63, %v1045_v11  ;;  %v1461_v21 = vadd.f32 %v777_v18, %v2684_v41  ;;  %v1072_v63 = vmax.f32 %v2648_v59, 0.0 }
 0x182   :  { %v1050_v28 = vmax.f32 %v1460_v9, 0.0 }
 0x183   :  { %v1051_v2 = vmax.f32 %v1461_v21, 0.0  ;;  %v781_v31 = vpop.f32.mrb[22].mxu1 }
 0x184   :  { %v2708_v32 = vmax.f32 %v1050_v28, %v1053_v23  ;;  %v1462_v46 = vadd.f32 %v781_v31, %v2676_v51  ;;  %v783_v20 = vpop.f32.mrb[23].mxu1 }
 0x185   :  { %v1090_v35 = vmax.f32 %v1048_v34, %v1051_v2  ;;  %v1463_v30 = vadd.f32 %v783_v20, %v2684_v41 }
 0x186   :  { %v1056_v36 = vmax.f32 %v1462_v46, 0.0 }
 0x187   :  { %v1057_v42 = vmax.f32 %v1463_v30, 0.0  ;;  %v787_v8 = vpop.f32.mrb[24].mxu1 }
 0x188   :  { %v1095_v62 = vmax.f32 %v1056_v36, %v1059_v37  ;;  %v1464_v15 = vadd.f32 %v787_v8, %v2676_v51  ;;  %v789_v0 = vpop.f32.mrb[25].mxu1 }
 0x189   :  { %v1093_v47 = vmax.f32 %v1054_v57, %v1057_v42  ;;  %v1465_v33 = vadd.f32 %v789_v0, %v2684_v41 }
 0x18a   :  { %v1062_v52 = vmax.f32 %v1464_v15, 0.0 }
 0x18b   :  { %v1063_v17 = vmax.f32 %v1465_v33, 0.0  ;;  %v793_v22 = vpop.f32.mrb[26].mxu1 }
 0x18c   :  { %v1098_v43 = vmax.f32 %v1062_v52, %v1065_v29  ;;  %v1466_v12 = vadd.f32 %v793_v22, %v2676_v51  ;;  %v795_v50 = vpop.f32.mrb[27].mxu1 }
 0x18d   :  { %v1096_v58 = vmax.f32 %v1060_v55, %v1063_v17  ;;  %v1467_v3 = vadd.f32 %v795_v50, %v2684_v41 }
 0x18e   :  { %v1110_v40 = vmax.f32 %v1086_v4, %v1098_v43  ;;  %v1068_v60 = vmax.f32 %v1466_v12, 0.0 }
 0x18f   :  { %v1108_v61 = vmax.f32 %v1084_v7, %v1096_v58  ;;  %v1069_v27 = vmax.f32 %v1467_v3, 0.0  ;;  %v799_v26 = vpop.f32.mrb[28].mxu1 }
 0x190   :  { %1122 = vst [vmem:[%s2761_s3 + $0x10] sm:$0xff] %v1110_v40  ;;  %v1101_v6 = vmax.f32 %v1068_v60, %v1071_v54  ;;  %v1468_v49 = vadd.f32 %v799_v26, %v2676_v51  ;;  %v801_v1 = vpop.f32.mrb[29].mxu1 }
 0x191   :  { %1120 = vst [vmem:[%s2761_s3] sm:$0xff] %v1108_v61  ;;  %v1099_v53 = vmax.f32 %v1066_v24, %v1069_v27  ;;  %v1469_v4 = vadd.f32 %v801_v1, %v2684_v41 }
 0x192   :  { %v1113_v7 = vmax.f32 %v1089_v5, %v1101_v6  ;;  %v1074_v10 = vmax.f32 %v1468_v49, 0.0  ;;  %v1083_v5 = vmax.f32 %v1487_v44, 0.0 }
 0x193   :  { %v1111_v11 = vmax.f32 %v1087_v19, %v1099_v53  ;;  %v1075_v13 = vmax.f32 %v1469_v4, 0.0  ;;  %v805_v9 = vpop.f32.mrb[30].mxu1 }
 0x194   :  { %1125 = vst [vmem:[%s2761_s3 + $0x28] sm:$0xff] %v1113_v7  ;;  %v1104_v18 = vmax.f32 %v1074_v10, %v1077_v56  ;;  %v1470_v21 = vadd.f32 %v805_v9, %v2676_v51  ;;  %v807_v23 = vpop.f32.mrb[31].mxu1 }
 0x195   :  { %1123 = vst [vmem:[%s2761_s3 + $0x18] sm:$0xff] %v1111_v11  ;;  %v1102_v38 = vmax.f32 %v1072_v63, %v1075_v13  ;;  %v1471_v14 = vadd.f32 %v807_v23, %v2684_v41 }
 0x196   :  { %v1116_v59 = vmax.f32 %v2708_v32, %v1104_v18  ;;  %v1080_v19 = vmax.f32 %v1470_v21, 0.0 }
 0x197   :  { %v1114_v28 = vmax.f32 %v1090_v35, %v1102_v38  ;;  %v1081_v34 = vmax.f32 %v1471_v14, 0.0 }
 0x198   :  { %1128 = vst [vmem:[%s2761_s3 + $0x40] sm:$0xff] %v1116_v59  ;;  %v1107_v51 = vmax.f32 %v1080_v19, %v1083_v5 }
 0x199   :  { %1126 = vst [vmem:[%s2761_s3 + $0x30] sm:$0xff] %v1114_v28  ;;  %v1105_v2 = vmax.f32 %v1078_v16, %v1081_v34 }
 0x19a   :  { %v1119_v31 = vmax.f32 %v1095_v62, %v1107_v51 }
 0x19b   :  { %v1117_v41 = vmax.f32 %v1093_v47, %v1105_v2 }
 0x19c   :  { %1131 = vst [vmem:[%s2761_s3 + $0x58] sm:$0xff] %v1119_v31 }
 0x19d   :  { %1129 = vst [vmem:[%s2761_s3 + $0x48] sm:$0xff] %v1117_v41 }

// kernel: simple_cnn_forward.3
= control target key start
LH: loop header
LB: loop body
LE: loop exit
PB: predicated region body
PF: predicated region fallthrough
CT: control target
= control target key end

     0   :  { %10 = vsyncpa [#allocation4], 0  ;;  %s1643_s18 = smov 0   ;;  %s1946_s0 = inlined_call_operand.vmem [shape: f32[2,6144], index: 0, kind: input, shape index: {}]   ;;  %s1947_s1 = inlined_call_operand.vmem [shape: f32[6144,64], index: 1, kind: input, shape index: {}]   ;;  %s1948_s2 = inlined_call_operand.vmem [shape: f32[1,64], index: 2, kind: input, shape index: {}]   ;;  %s1949_s3 = inlined_call_operand.vmem [shape: f32[64,10], index: 3, kind: input, shape index: {}]   ;;  %s1950_s4 = inlined_call_operand.vmem [shape: f32[1,10], index: 4, kind: input, shape index: {}]   ;;  %s1951_s5 = inlined_call_operand.hbm [shape: f32[2,10], index: 5, kind: output, shape index: {}]  }
   0x1 LB: > { %s1649_s19 = sadd.s32 4294967295, %s1605_s18   ;;  %p1092_p0 = scmp.ge.s32.totalorder %s1605_s18, 1  ;;  %s1605_s18 = sphi %s1643_s18, %s16_s18  }
   0x2   : > { %p195_p1 = scmp.lt.s32.totalorder %s1605_s18, 5 }
   0x4   : > { %p196_p2 = pnand %p1092_p0, %p195_p1 }
   0x5   : > { %s223_s20 = smul.u32 (!%p196_p2), 12, %s1649_s19  ;;  %p1095_p5 = scmp.ne.s32.totalorder (!%p196_p2), %s1649_s19, 0 }
   0x6   : > { %199 = sbr.rel (%p196_p2) target bundleno = 596 (0x254), region = 40 }
   0x7   : > { %s229_s21 = smul.u32 (!%p196_p2), 192, %s1649_s19  ;;  %p224_p3 = scmp.lt.s32.totalorder (!%p196_p2), %s223_s20, 47 }
   0x9   : > { %p230_p4 = scmp.lt.s32.totalorder (!%p196_p2), %s229_s21, 767 }
   0xd   : > { %s1953_s20 = smov (!%p224_p3, %s223_s20), 47  ;;  %s1955_s21 = smov (!%p230_p4, %s229_s21), 767 }
   0xe   : > { %s1093_s22 = sshll.u32 %s1953_s20, 1  ;;  %s1094_s26 = sshll.u32 %s1955_s21, 3  ;;  %vm239_vm0 = vcmask (!%p1095_p5), 517120   ;;  %v1607_v0 = vmov (!%p1095_p5), 0.0  }
   0xf   : > { %s1658_s25 = scalar_lea.vmem %s1946_s0, %s1093_s22  ;;  %s1663_s29 = scalar_lea.vmem %s1947_s1, %s1094_s26  ;;  %240 = vst.msk [vmem:[#allocation2] sm:$0x3] (!%p1095_p5), %vm239_vm0, %v1607_v0 }
  0x10   : > { %238 = sbr.rel (%p1095_p5) target bundleno = 23 (0x17), region = 44 }
  0x17 PF: > { %v261_v1 = vld [vmem:[%s1663_s29 + $0x80] sm:$0xff]  ;;  %v262_v2 = vld [vmem:[%s1663_s29 + $0x88] sm:$0xff]  ;;  %v263_v12 = vld [vmem:[%s1663_s29 + $0x90] sm:$0xff]  ;;  %v1608_v48 = vmov 1983009808   ;;  %v444_v50 = vlaneseq  ;;  %vm924_vm1 = vcmask 517120  }
  0x18   : > { %v293_v3 = vld [vmem:[%s1663_s29 + $0x180] sm:$0xff]  ;;  %v1342_v4 = vpack.c.bf16 %v262_v2, %v261_v1  ;;  %v294_v5 = vld [vmem:[%s1663_s29 + $0x188] sm:$0xff]  ;;  %v264_v14 = vld [vmem:[%s1663_s29 + $0x98] sm:$0xff]  ;;  %v442_v49 = vunpack.c.l.s4 %v1608_v48  ;;  %p1096_p6 = scmp.ne.s32.totalorder %s1649_s19, 3 }
  0x19   : > { %v245_v6 = vld [vmem:[%s1663_s29] sm:$0xff]  ;;  %v246_v7 = vld [vmem:[%s1663_s29 + $0x8] sm:$0xff]  ;;  %v1374_v8 = vpack.c.bf16 %v294_v5, %v293_v3  ;;  %v295_v15 = vld [vmem:[%s1663_s29 + $0x190] sm:$0xff]  ;;  %v1346_v17 = vpack.c.bf16 %v264_v14, %v263_v12  ;;  %v445_v1 = vshrl.u32 %v444_v50, 7  ;;  %vm1610_vm2 = vmmov (!%p1096_p6), 0  }
  0x1a   : > { %v1344_v9 = vpack.c.bf16 %v246_v7, %v245_v6  ;;  %v277_v10 = vld [vmem:[%s1663_s29 + $0x100] sm:$0xff]  ;;  %v278_v11 = vld [vmem:[%s1663_s29 + $0x108] sm:$0xff]  ;;  %1343 = vmatprep.subr.bf16.mxu0 %v1342_v4  ;;  %v296_v16 = vld [vmem:[%s1663_s29 + $0x198] sm:$0xff]  ;;  %v443_v0 = vunpack.c.0.s8 %v442_v49  ;;  %vm955_vm3 = vcmask (!%p1096_p6), 523264   ;;  %vm1029_vm4 = vcmask (!%p1096_p6), 74752  }
  0x1b   : > { %v1376_v13 = vpack.c.bf16 %v278_v11, %v277_v10  ;;  %1375 = vmatprep.subr.bf16.mxu1 %v1374_v8  ;;  %v1378_v18 = vpack.c.bf16 %v296_v16, %v295_v15  ;;  %v247_v19 = vld [vmem:[%s1663_s29 + $0x10] sm:$0xff]  ;;  %v248_v20 = vld [vmem:[%s1663_s29 + $0x18] sm:$0xff]  ;;  %v265_v24 = vld [vmem:[%s1663_s29 + $0xa0] sm:$0xff] }
  0x1c   : > { %1345 = vmatpush3.bf16.msra.mxu0 %v1344_v9  ;;  %v279_v21 = vld [vmem:[%s1663_s29 + $0x110] sm:$0xff]  ;;  %v1348_v22 = vpack.c.bf16 %v248_v20, %v247_v19  ;;  %v280_v23 = vld [vmem:[%s1663_s29 + $0x118] sm:$0xff]  ;;  %v266_v25 = vld [vmem:[%s1663_s29 + $0xa8] sm:$0xff]  ;;  %v1716_v14 = vsub.s32 %v443_v0, %v445_v1 }
  0x1d   : > { %1377 = vmatpush3.bf16.msra.mxu1 %v1376_v13  ;;  %1347 = vmatprep.subr.bf16.mxu0 %v1346_v17  ;;  %v1380_v26 = vpack.c.bf16 %v280_v23, %v279_v21  ;;  %v1350_v27 = vpack.c.bf16 %v266_v25, %v265_v24  ;;  %v297_v28 = vld [vmem:[%s1663_s29 + $0x1a0] sm:$0xff]  ;;  %v298_v29 = vld [vmem:[%s1663_s29 + $0x1a8] sm:$0xff]  ;;  %v267_v36 = vld [vmem:[%s1663_s29 + $0xb0] sm:$0xff] }
  0x1e   : > { %1379 = vmatprep.subr.bf16.mxu1 %v1378_v18  ;;  %v249_v30 = vld [vmem:[%s1663_s29 + $0x20] sm:$0xff]  ;;  %v1382_v31 = vpack.c.bf16 %v298_v29, %v297_v28  ;;  %v250_v32 = vld [vmem:[%s1663_s29 + $0x28] sm:$0xff]  ;;  %v268_v37 = vld [vmem:[%s1663_s29 + $0xb8] sm:$0xff] }
  0x1f   : > { %v281_v33 = vld [vmem:[%s1663_s29 + $0x120] sm:$0xff]  ;;  %v282_v34 = vld [vmem:[%s1663_s29 + $0x128] sm:$0xff]  ;;  %v1352_v35 = vpack.c.bf16 %v250_v32, %v249_v30  ;;  %v299_v38 = vld [vmem:[%s1663_s29 + $0x1b0] sm:$0xff]  ;;  %v1354_v40 = vpack.c.bf16 %v268_v37, %v267_v36 }
  0x20   : > { %1349 = vmatpush3.bf16.msra.mxu0 %v1348_v22  ;;  %v1384_v39 = vpack.c.bf16 %v282_v34, %v281_v33  ;;  %v300_v41 = vld [vmem:[%s1663_s29 + $0x1b8] sm:$0xff]  ;;  %v251_v42 = vld [vmem:[%s1663_s29 + $0x30] sm:$0xff]  ;;  %v269_v47 = vld [vmem:[%s1663_s29 + $0xc0] sm:$0xff] }
  0x21   : > { %1381 = vmatpush3.bf16.msra.mxu1 %v1380_v26  ;;  %1351 = vmatprep.subr.bf16.mxu0 %v1350_v27  ;;  %v252_v43 = vld [vmem:[%s1663_s29 + $0x38] sm:$0xff]  ;;  %v1386_v44 = vpack.c.bf16 %v300_v41, %v299_v38  ;;  %v283_v45 = vld [vmem:[%s1663_s29 + $0x130] sm:$0xff]  ;;  %v270_v51 = vld [vmem:[%s1663_s29 + $0xc8] sm:$0xff] }
  0x22   : > { %1383 = vmatprep.subr.bf16.mxu1 %v1382_v31  ;;  %v284_v46 = vld [vmem:[%s1663_s29 + $0x138] sm:$0xff]  ;;  %v301_v52 = vld [vmem:[%s1663_s29 + $0x1c0] sm:$0xff]  ;;  %v302_v53 = vld [vmem:[%s1663_s29 + $0x1c8] sm:$0xff]  ;;  %v1356_v54 = vpack.c.bf16 %v252_v43, %v251_v42  ;;  %v1358_v56 = vpack.c.bf16 %v270_v51, %v269_v47 }
  0x23   : > { %v1388_v55 = vpack.c.bf16 %v284_v46, %v283_v45  ;;  %v253_v57 = vld [vmem:[%s1663_s29 + $0x40] sm:$0xff]  ;;  %v254_v58 = vld [vmem:[%s1663_s29 + $0x48] sm:$0xff]  ;;  %v1390_v60 = vpack.c.bf16 %v302_v53, %v301_v52  ;;  %v271_v62 = vld [vmem:[%s1663_s29 + $0xd0] sm:$0xff] }
  0x24   : > { %1353 = vmatpush3.bf16.msra.mxu0 %v1352_v35  ;;  %v285_v59 = vld [vmem:[%s1663_s29 + $0x140] sm:$0xff]  ;;  %v286_v61 = vld [vmem:[%s1663_s29 + $0x148] sm:$0xff]  ;;  %v272_v63 = vld [vmem:[%s1663_s29 + $0xd8] sm:$0xff]  ;;  %v1360_v4 = vpack.c.bf16 %v254_v58, %v253_v57 }
  0x25   : > { %1385 = vmatpush3.bf16.msra.mxu1 %v1384_v39  ;;  %1355 = vmatprep.subr.bf16.mxu0 %v1354_v40  ;;  %v303_v2 = vld [vmem:[%s1663_s29 + $0x1d0] sm:$0xff]  ;;  %v304_v3 = vld [vmem:[%s1663_s29 + $0x1d8] sm:$0xff]  ;;  %v1392_v5 = vpack.c.bf16 %v286_v61, %v285_v59  ;;  %v1362_v6 = vpack.c.bf16 %v272_v63, %v271_v62  ;;  %v273_v12 = vld [vmem:[%s1663_s29 + $0xe0] sm:$0xff] }
  0x26   : > { %1387 = vmatprep.subr.bf16.mxu1 %v1386_v44  ;;  %v255_v7 = vld [vmem:[%s1663_s29 + $0x50] sm:$0xff]  ;;  %v256_v8 = vld [vmem:[%s1663_s29 + $0x58] sm:$0xff]  ;;  %v1394_v10 = vpack.c.bf16 %v304_v3, %v303_v2  ;;  %v274_v13 = vld [vmem:[%s1663_s29 + $0xe8] sm:$0xff] }
  0x27   : > { %v287_v9 = vld [vmem:[%s1663_s29 + $0x150] sm:$0xff]  ;;  %v288_v11 = vld [vmem:[%s1663_s29 + $0x158] sm:$0xff]  ;;  %v305_v15 = vld [vmem:[%s1663_s29 + $0x1e0] sm:$0xff]  ;;  %v1364_v17 = vpack.c.bf16 %v256_v8, %v255_v7  ;;  %v1366_v20 = vpack.c.bf16 %v274_v13, %v273_v12 }
  0x28   : > { %1357 = vmatpush3.bf16.msra.mxu0 %v1356_v54  ;;  %v306_v16 = vld [vmem:[%s1663_s29 + $0x1e8] sm:$0xff]  ;;  %v257_v18 = vld [vmem:[%s1663_s29 + $0x60] sm:$0xff]  ;;  %v1396_v19 = vpack.c.bf16 %v288_v11, %v287_v9  ;;  %v275_v26 = vld [vmem:[%s1663_s29 + $0xf0] sm:$0xff] }
  0x29   : > { %1389 = vmatpush3.bf16.msra.mxu1 %v1388_v55  ;;  %1359 = vmatprep.subr.bf16.mxu0 %v1358_v56  ;;  %v258_v21 = vld [vmem:[%s1663_s29 + $0x68] sm:$0xff]  ;;  %v289_v22 = vld [vmem:[%s1663_s29 + $0x160] sm:$0xff]  ;;  %v1398_v24 = vpack.c.bf16 %v306_v16, %v305_v15  ;;  %v276_v27 = vld [vmem:[%s1663_s29 + $0xf8] sm:$0xff] }
  0x2a   : > { %1391 = vmatprep.subr.bf16.mxu1 %v1390_v60  ;;  %v242_v23 = vld [vmem:[%s1658_s25] sm:$0xff]  ;;  %v290_v25 = vld [vmem:[%s1663_s29 + $0x168] sm:$0xff]  ;;  %v307_v30 = vld [vmem:[%s1663_s29 + $0x1f0] sm:$0xff]  ;;  %v1368_v32 = vpack.c.bf16 %v258_v21, %v257_v18  ;;  %v1370_v36 = vpack.c.bf16 %v276_v27, %v275_v26 }
  0x2b   : > { %v447_v28 = vrot.slane %v242_v23, %v1716_v14  ;;  %v440_v29 = vcombine.high %v242_v23, %v242_v23  ;;  %v308_v31 = vld [vmem:[%s1663_s29 + $0x1f8] sm:$0xff]  ;;  %v1400_v35 = vpack.c.bf16 %v290_v25, %v289_v22  ;;  %v259_v37 = vld [vmem:[%s1663_s29 + $0x70] sm:$0xff]  ;;  %v325_v43 = vld [vmem:[%s1663_s29 + $0x280] sm:$0xff] }
  0x2c   : > { %1361 = vmatpush3.bf16.msra.mxu0 %v1360_v4  ;;  %v260_v38 = vld [vmem:[%s1663_s29 + $0x78] sm:$0xff]  ;;  %v291_v39 = vld [vmem:[%s1663_s29 + $0x170] sm:$0xff]  ;;  %v1402_v40 = vpack.c.bf16 %v308_v31, %v307_v30  ;;  %v326_v44 = vld [vmem:[%s1663_s29 + $0x288] sm:$0xff] }
  0x2d   : > { %1393 = vmatpush3.bf16.msra.mxu1 %v1392_v5  ;;  %1363 = vmatprep.subr.bf16.mxu0 %v1362_v6  ;;  %v455_v33 = vcombine.high %v447_v28, %v447_v28  ;;  %v454_v34 = vrot.slane %v440_v29, %v1716_v14  ;;  %v292_v41 = vld [vmem:[%s1663_s29 + $0x178] sm:$0xff]  ;;  %v357_v45 = vld [vmem:[%s1663_s29 + $0x380] sm:$0xff]  ;;  %v358_v46 = vld [vmem:[%s1663_s29 + $0x388] sm:$0xff]  ;;  %v1372_v47 = vpack.c.bf16 %v260_v38, %v259_v37 }
  0x2e   : > { %1395 = vmatprep.subr.bf16.mxu1 %v1394_v10  ;;  %v1404_v48 = vpack.c.bf16 %v292_v41, %v291_v39  ;;  %v1406_v49 = vpack.c.bf16 %v326_v44, %v325_v43  ;;  %v309_v50 = vld [vmem:[%s1663_s29 + $0x200] sm:$0xff]  ;;  %v310_v51 = vld [vmem:[%s1663_s29 + $0x208] sm:$0xff]  ;;  %v1438_v53 = vpack.c.bf16 %v358_v46, %v357_v45  ;;  %v327_v55 = vld [vmem:[%s1663_s29 + $0x290] sm:$0xff] }
  0x2f   : > { %567 = vmatprep.mubr.f32.mxu0 %v455_v33  ;;  %v456_v42 = vcombine.high %v454_v34, %v454_v34  ;;  %v341_v52 = vld [vmem:[%s1663_s29 + $0x300] sm:$0xff]  ;;  %v342_v54 = vld [vmem:[%s1663_s29 + $0x308] sm:$0xff]  ;;  %v328_v56 = vld [vmem:[%s1663_s29 + $0x298] sm:$0xff]  ;;  %v1408_v59 = vpack.c.bf16 %v310_v51, %v309_v50 }
  0x30   : > { %1365 = vmatpush3.bf16.msra.mxu0 %v1364_v17  ;;  %v359_v57 = vld [vmem:[%s1663_s29 + $0x390] sm:$0xff]  ;;  %v360_v58 = vld [vmem:[%s1663_s29 + $0x398] sm:$0xff]  ;;  %v1440_v60 = vpack.c.bf16 %v342_v54, %v341_v52  ;;  %v1410_v61 = vpack.c.bf16 %v328_v56, %v327_v55  ;;  %v329_v3 = vld [vmem:[%s1663_s29 + $0x2a0] sm:$0xff] }
  0x31   : > { %1397 = vmatpush3.bf16.msra.mxu1 %v1396_v19  ;;  %1367 = vmatprep.subr.bf16.mxu0 %v1366_v20  ;;  %v311_v62 = vld [vmem:[%s1663_s29 + $0x210] sm:$0xff]  ;;  %v312_v63 = vld [vmem:[%s1663_s29 + $0x218] sm:$0xff]  ;;  %v1442_v1 = vpack.c.bf16 %v360_v58, %v359_v57  ;;  %v330_v4 = vld [vmem:[%s1663_s29 + $0x2a8] sm:$0xff] }
  0x32   : > { %1399 = vmatprep.subr.bf16.mxu1 %v1398_v24  ;;  %637 = vmatprep.mubr.f32.mxu1 %v456_v42  ;;  %v343_v0 = vld [vmem:[%s1663_s29 + $0x310] sm:$0xff]  ;;  %v344_v2 = vld [vmem:[%s1663_s29 + $0x318] sm:$0xff]  ;;  %v361_v5 = vld [vmem:[%s1663_s29 + $0x3a0] sm:$0xff]  ;;  %v1412_v7 = vpack.c.bf16 %v312_v63, %v311_v62  ;;  %v1414_v9 = vpack.c.bf16 %v330_v4, %v329_v3 }
  0x33   : > { %v362_v6 = vld [vmem:[%s1663_s29 + $0x3a8] sm:$0xff]  ;;  %v1444_v8 = vpack.c.bf16 %v344_v2, %v343_v0  ;;  %v313_v10 = vld [vmem:[%s1663_s29 + $0x220] sm:$0xff]  ;;  %v331_v16 = vld [vmem:[%s1663_s29 + $0x2b0] sm:$0xff] }
  0x34   : > { %1369 = vmatpush3.bf16.msra.mxu0 %v1368_v32  ;;  %v314_v11 = vld [vmem:[%s1663_s29 + $0x228] sm:$0xff]  ;;  %v345_v12 = vld [vmem:[%s1663_s29 + $0x320] sm:$0xff]  ;;  %v1446_v13 = vpack.c.bf16 %v362_v6, %v361_v5  ;;  %v332_v17 = vld [vmem:[%s1663_s29 + $0x2b8] sm:$0xff] }
  0x35   : > { %1401 = vmatpush3.bf16.msra.mxu1 %v1400_v35  ;;  %1371 = vmatprep.subr.bf16.mxu0 %v1370_v36  ;;  %v346_v15 = vld [vmem:[%s1663_s29 + $0x328] sm:$0xff]  ;;  %v363_v18 = vld [vmem:[%s1663_s29 + $0x3b0] sm:$0xff]  ;;  %v364_v19 = vld [vmem:[%s1663_s29 + $0x3b8] sm:$0xff]  ;;  %v1416_v20 = vpack.c.bf16 %v314_v11, %v313_v10  ;;  %v1418_v22 = vpack.c.bf16 %v332_v17, %v331_v16 }
  0x36   : > { %1403 = vmatprep.subr.bf16.mxu1 %v1402_v40  ;;  %v1448_v21 = vpack.c.bf16 %v346_v15, %v345_v12  ;;  %v315_v23 = vld [vmem:[%s1663_s29 + $0x230] sm:$0xff]  ;;  %v316_v24 = vld [vmem:[%s1663_s29 + $0x238] sm:$0xff]  ;;  %v1450_v26 = vpack.c.bf16 %v364_v19, %v363_v18  ;;  %v334_v29 = vld [vmem:[%s1663_s29 + $0x2c8] sm:$0xff] }
  0x37   : > { %v347_v25 = vld [vmem:[%s1663_s29 + $0x330] sm:$0xff]  ;;  %v348_v27 = vld [vmem:[%s1663_s29 + $0x338] sm:$0xff]  ;;  %v365_v30 = vld [vmem:[%s1663_s29 + $0x3c0] sm:$0xff]  ;;  %v1420_v33 = vpack.c.bf16 %v316_v24, %v315_v23 }
  0x38   : > { %1373 = vmatpush3.bf16.msra.mxu0 %v1372_v47  ;;  %v366_v31 = vld [vmem:[%s1663_s29 + $0x3c8] sm:$0xff]  ;;  %v1452_v36 = vpack.c.bf16 %v348_v27, %v347_v25  ;;  %v317_v38 = vld [vmem:[%s1663_s29 + $0x240] sm:$0xff]  ;;  %v335_v43 = vld [vmem:[%s1663_s29 + $0x2d0] sm:$0xff] }
  0x39   : > { %1405 = vmatpush3.bf16.msra.mxu1 %v1404_v48  ;;  %1407 = vmatprep.subr.bf16.mxu0 %v1406_v49  ;;  %v243_v32 = vld [vmem:[%s1658_s25 + $0x8] sm:$0xff]  ;;  %v349_v40 = vld [vmem:[%s1663_s29 + $0x340] sm:$0xff]  ;;  %v1454_v41 = vpack.c.bf16 %v366_v31, %v365_v30  ;;  %v336_v44 = vld [vmem:[%s1663_s29 + $0x2d8] sm:$0xff] }
  0x3a   : > { %1439 = vmatprep.subr.bf16.mxu1 %v1438_v53  ;;  %v457_v35 = vcombine.high %v243_v32, %v243_v32  ;;  %v318_v39 = vld [vmem:[%s1663_s29 + $0x248] sm:$0xff]  ;;  %v367_v47 = vld [vmem:[%s1663_s29 + $0x3d0] sm:$0xff]  ;;  %v368_v48 = vld [vmem:[%s1663_s29 + $0x3d8] sm:$0xff]  ;;  %v1426_v52 = vpack.c.bf16 %v336_v44, %v335_v43 }
  0x3b   : > { %568 = vmatmul.mubr.f32.vlgmr.msra.gmra.mrb[0].mxu0 %v447_v28  ;;  %v333_v28 = vld [vmem:[%s1663_s29 + $0x2c0] sm:$0xff]  ;;  %v350_v42 = vld [vmem:[%s1663_s29 + $0x348] sm:$0xff]  ;;  %v1424_v49 = vpack.c.bf16 %v318_v39, %v317_v38  ;;  %v319_v53 = vld [vmem:[%s1663_s29 + $0x250] sm:$0xff]  ;;  %v1458_v56 = vpack.c.bf16 %v368_v48, %v367_v47 }
  0x3c   : > { %638 = vmatmul.mubr.f32.vlgmr.msra.gmra.mrb[0].mxu1 %v454_v34  ;;  %1409 = vmatpush3.bf16.msra.mxu0 %v1408_v59  ;;  %v1773_v34 = vrot.slane %v243_v32, %v1716_v14  ;;  %v1422_v37 = vpack.c.bf16 %v334_v29, %v333_v28  ;;  %v1784_v46 = vrot.slane %v457_v35, %v1716_v14  ;;  %v320_v54 = vld [vmem:[%s1663_s29 + $0x258] sm:$0xff]  ;;  %v351_v55 = vld [vmem:[%s1663_s29 + $0x350] sm:$0xff]  ;;  %v337_v58 = vld [vmem:[%s1663_s29 + $0x2e0] sm:$0xff] }
  0x3d   : > { %1441 = vmatpush3.bf16.msra.mxu1 %v1440_v60  ;;  %1411 = vmatprep.subr.bf16.mxu0 %v1410_v61  ;;  %v1456_v51 = vpack.c.bf16 %v350_v42, %v349_v40  ;;  %v352_v57 = vld [vmem:[%s1663_s29 + $0x358] sm:$0xff]  ;;  %v338_v59 = vld [vmem:[%s1663_s29 + $0x2e8] sm:$0xff]  ;;  %v369_v60 = vld [vmem:[%s1663_s29 + $0x3e0] sm:$0xff]  ;;  %v1428_v62 = vpack.c.bf16 %v320_v54, %v319_v53 }
  0x3e   : > { %1443 = vmatprep.subr.bf16.mxu1 %v1442_v1  ;;  %v472_v45 = vcombine.high %v1773_v34, %v1773_v34  ;;  %v473_v50 = vcombine.high %v1784_v46, %v1784_v46  ;;  %v370_v61 = vld [vmem:[%s1663_s29 + $0x3e8] sm:$0xff]  ;;  %v1460_v63 = vpack.c.bf16 %v352_v57, %v351_v55  ;;  %v1430_v0 = vpack.c.bf16 %v338_v59, %v337_v58  ;;  %v321_v1 = vld [vmem:[%s1663_s29 + $0x260] sm:$0xff]  ;;  %v339_v6 = vld [vmem:[%s1663_s29 + $0x2f0] sm:$0xff] }
  0x3f   : > { %v322_v2 = vld [vmem:[%s1663_s29 + $0x268] sm:$0xff]  ;;  %v353_v3 = vld [vmem:[%s1663_s29 + $0x360] sm:$0xff]  ;;  %v1462_v4 = vpack.c.bf16 %v370_v61, %v369_v60  ;;  %v324_v15 = vld [vmem:[%s1663_s29 + $0x278] sm:$0xff] }
  0x40   : > { %1413 = vmatpush3.bf16.msra.mxu0 %v1412_v7  ;;  %707 = vmatprep.mubr.f32.mxu0 %v472_v45  ;;  %v354_v5 = vld [vmem:[%s1663_s29 + $0x368] sm:$0xff]  ;;  %v340_v7 = vld [vmem:[%s1663_s29 + $0x2f8] sm:$0xff]  ;;  %v1432_v10 = vpack.c.bf16 %v322_v2, %v321_v1  ;;  %v355_v16 = vld [vmem:[%s1663_s29 + $0x370] sm:$0xff] }
  0x41   : > { %1445 = vmatpush3.bf16.msra.mxu1 %v1444_v8  ;;  %1415 = vmatprep.subr.bf16.mxu0 %v1414_v9  ;;  %v371_v8 = vld [vmem:[%s1663_s29 + $0x3f0] sm:$0xff]  ;;  %v372_v9 = vld [vmem:[%s1663_s29 + $0x3f8] sm:$0xff]  ;;  %v1464_v11 = vpack.c.bf16 %v354_v5, %v353_v3  ;;  %v1434_v12 = vpack.c.bf16 %v340_v7, %v339_v6  ;;  %v389_v19 = vld [vmem:[%s1663_s29 + $0x480] sm:$0xff] }
  0x42   : > { %1447 = vmatprep.subr.bf16.mxu1 %v1446_v13  ;;  %777 = vmatprep.mubr.f32.mxu1 %v473_v50  ;;  %v323_v13 = vld [vmem:[%s1663_s29 + $0x270] sm:$0xff]  ;;  %v1466_v17 = vpack.c.bf16 %v372_v9, %v371_v8  ;;  %v356_v18 = vld [vmem:[%s1663_s29 + $0x378] sm:$0xff]  ;;  %v373_v24 = vld [vmem:[%s1663_s29 + $0x400] sm:$0xff] }
  0x43   : > { %v1436_v23 = vpack.c.bf16 %v324_v15, %v323_v13  ;;  %v1468_v25 = vpack.c.bf16 %v356_v18, %v355_v16  ;;  %v374_v27 = vld [vmem:[%s1663_s29 + $0x408] sm:$0xff]  ;;  %v405_v28 = vld [vmem:[%s1663_s29 + $0x500] sm:$0xff]  ;;  %v391_v31 = vld [vmem:[%s1663_s29 + $0x490] sm:$0xff] }
  0x44   : > { %1417 = vmatpush3.bf16.msra.mxu0 %v1416_v20  ;;  %v390_v20 = vld [vmem:[%s1663_s29 + $0x488] sm:$0xff]  ;;  %v392_v32 = vld [vmem:[%s1663_s29 + $0x498] sm:$0xff]  ;;  %v244_v38 = vld [vmem:[%s1658_s25 + $0x10] sm:$0xff] }
  0x45   : > { %1449 = vmatpush3.bf16.msra.mxu1 %v1448_v21  ;;  %1419 = vmatprep.subr.bf16.mxu0 %v1418_v22  ;;  %v421_v21 = vld [vmem:[%s1663_s29 + $0x580] sm:$0xff]  ;;  %v422_v22 = vld [vmem:[%s1663_s29 + $0x588] sm:$0xff]  ;;  %v424_v35 = vld [vmem:[%s1663_s29 + $0x598] sm:$0xff]  ;;  %v1474_v39 = vpack.c.bf16 %v392_v32, %v391_v31  ;;  %v1827_v43 = vrot.slane %v244_v38, %v1716_v14  ;;  %v474_v44 = vcombine.high %v244_v38, %v244_v38 }
  0x46   : > { %1451 = vmatprep.subr.bf16.mxu1 %v1450_v26  ;;  %v1470_v26 = vpack.c.bf16 %v390_v20, %v389_v19  ;;  %v406_v29 = vld [vmem:[%s1663_s29 + $0x508] sm:$0xff]  ;;  %v1502_v30 = vpack.c.bf16 %v422_v22, %v421_v21  ;;  %v375_v40 = vld [vmem:[%s1663_s29 + $0x410] sm:$0xff]  ;;  %v408_v47 = vld [vmem:[%s1663_s29 + $0x518] sm:$0xff] }
  0x47   : > { %v407_v42 = vld [vmem:[%s1663_s29 + $0x510] sm:$0xff]  ;;  %v393_v48 = vld [vmem:[%s1663_s29 + $0x4a0] sm:$0xff]  ;;  %v1838_v53 = vrot.slane %v474_v44, %v1716_v14  ;;  %v378_v57 = vld [vmem:[%s1663_s29 + $0x428] sm:$0xff] }
  0x48   : > { %1421 = vmatpush3.bf16.msra.mxu0 %v1420_v33  ;;  %v423_v33 = vld [vmem:[%s1663_s29 + $0x590] sm:$0xff]  ;;  %v425_v50 = vld [vmem:[%s1663_s29 + $0x5a0] sm:$0xff]  ;;  %v410_v60 = vld [vmem:[%s1663_s29 + $0x528] sm:$0xff] }
  0x49   : > { %1453 = vmatpush3.bf16.msra.mxu1 %v1452_v36  ;;  %1423 = vmatprep.subr.bf16.mxu0 %v1422_v37  ;;  %v1472_v36 = vpack.c.bf16 %v374_v27, %v373_v24  ;;  %v1504_v37 = vpack.c.bf16 %v406_v29, %v405_v28  ;;  %v1506_v45 = vpack.c.bf16 %v424_v35, %v423_v33  ;;  %v409_v58 = vld [vmem:[%s1663_s29 + $0x520] sm:$0xff]  ;;  %v396_v61 = vld [vmem:[%s1663_s29 + $0x4b8] sm:$0xff]  ;;  %v379_v3 = vld [vmem:[%s1663_s29 + $0x430] sm:$0xff] }
  0x4a   : > { %1455 = vmatprep.subr.bf16.mxu1 %v1454_v41  ;;  %v376_v41 = vld [vmem:[%s1663_s29 + $0x418] sm:$0xff]  ;;  %v490_v59 = vcombine.high %v1838_v53, %v1838_v53  ;;  %v1512_v1 = vpack.c.bf16 %v410_v60, %v409_v58  ;;  %v411_v5 = vld [vmem:[%s1663_s29 + $0x530] sm:$0xff]  ;;  %v397_v8 = vld [vmem:[%s1663_s29 + $0x4c0] sm:$0xff] }
  0x4b   : > { %v1476_v54 = vpack.c.bf16 %v376_v41, %v375_v40  ;;  %v412_v7 = vld [vmem:[%s1663_s29 + $0x538] sm:$0xff]  ;;  %v398_v9 = vld [vmem:[%s1663_s29 + $0x4c8] sm:$0xff]  ;;  %v381_v16 = vld [vmem:[%s1663_s29 + $0x440] sm:$0xff] }
  0x4c   : > { %1425 = vmatpush3.bf16.msra.mxu0 %v1424_v49  ;;  %v394_v49 = vld [vmem:[%s1663_s29 + $0x4a8] sm:$0xff]  ;;  %v1516_v13 = vpack.c.bf16 %v412_v7, %v411_v5  ;;  %v1486_v15 = vpack.c.bf16 %v398_v9, %v397_v8  ;;  %v413_v18 = vld [vmem:[%s1663_s29 + $0x540] sm:$0xff]  ;;  %v399_v21 = vld [vmem:[%s1663_s29 + $0x4d0] sm:$0xff] }
  0x4d   : > { %1457 = vmatpush3.bf16.msra.mxu1 %v1456_v51  ;;  %1427 = vmatprep.subr.bf16.mxu0 %v1426_v52  ;;  %v426_v51 = vld [vmem:[%s1663_s29 + $0x5a8] sm:$0xff]  ;;  %v489_v52 = vcombine.high %v1827_v43, %v1827_v43  ;;  %v1478_v55 = vpack.c.bf16 %v394_v49, %v393_v48  ;;  %v400_v22 = vld [vmem:[%s1663_s29 + $0x4d8] sm:$0xff]  ;;  %v383_v28 = vld [vmem:[%s1663_s29 + $0x450] sm:$0xff] }
  0x4e   : > { %1459 = vmatprep.subr.bf16.mxu1 %v1458_v56  ;;  %v377_v56 = vld [vmem:[%s1663_s29 + $0x420] sm:$0xff]  ;;  %v1510_v14 = vpack.c.bf16 %v426_v51, %v425_v50  ;;  %v414_v20 = vld [vmem:[%s1663_s29 + $0x548] sm:$0xff]  ;;  %v432_v24 = vld [vmem:[%s1663_s29 + $0x5d8] sm:$0xff]  ;;  %v1490_v27 = vpack.c.bf16 %v400_v22, %v399_v21 }
  0x4f   : > { %v384_v29 = vld [vmem:[%s1663_s29 + $0x458] sm:$0xff]  ;;  %v401_v33 = vld [vmem:[%s1663_s29 + $0x4e0] sm:$0xff]  ;;  %v402_v35 = vld [vmem:[%s1663_s29 + $0x4e8] sm:$0xff] }
  0x50   : > { %1429 = vmatpush3.bf16.msra.mxu0 %v1428_v62  ;;  %v427_v62 = vld [vmem:[%s1663_s29 + $0x5b0] sm:$0xff]  ;;  %v416_v32 = vld [vmem:[%s1663_s29 + $0x558] sm:$0xff]  ;;  %v1492_v38 = vpack.c.bf16 %v384_v29, %v383_v28  ;;  %v1494_v40 = vpack.c.bf16 %v402_v35, %v401_v33  ;;  %v385_v41 = vld [vmem:[%s1663_s29 + $0x460] sm:$0xff] }
  0x51   : > { %1461 = vmatpush3.bf16.msra.mxu1 %v1460_v63  ;;  %1431 = vmatprep.subr.bf16.mxu0 %v1430_v0  ;;  %v428_v63 = vld [vmem:[%s1663_s29 + $0x5b8] sm:$0xff]  ;;  %v1480_v0 = vpack.c.bf16 %v378_v57, %v377_v56  ;;  %v417_v44 = vld [vmem:[%s1663_s29 + $0x560] sm:$0xff]  ;;  %v403_v48 = vld [vmem:[%s1663_s29 + $0x4f0] sm:$0xff] }
  0x52   : > { %1463 = vmatprep.subr.bf16.mxu1 %v1462_v4  ;;  %v380_v4 = vld [vmem:[%s1663_s29 + $0x438] sm:$0xff]  ;;  %v1514_v6 = vpack.c.bf16 %v428_v63, %v427_v62  ;;  %v435_v50 = vld [vmem:[%s1663_s29 + $0x5f0] sm:$0xff]  ;;  %v941_v21 = vld [vmem:[%s1949_s3 + $0x8] sm:$0xff] (!%p1096_p6) }
  0x53   : > { %v404_v49 = vld [vmem:[%s1663_s29 + $0x4f8] sm:$0xff]  ;;  %v419_v58 = vld [vmem:[%s1663_s29 + $0x570] sm:$0xff]  ;;  %v944_v28 = vld [vmem:[%s1949_s3 + $0x20] sm:$0xff] (!%p1096_p6) }
  0x54   : > { %1433 = vmatpush3.bf16.msra.mxu0 %v1432_v10  ;;  %v429_v10 = vld [vmem:[%s1663_s29 + $0x5c0] sm:$0xff]  ;;  %v436_v51 = vld [vmem:[%s1663_s29 + $0x5f8] sm:$0xff]  ;;  %v942_v22 = vld [vmem:[%s1949_s3 + $0x10] sm:$0xff] (!%p1096_p6) }
  0x55   : > { %1465 = vmatpush3.bf16.msra.mxu1 %v1464_v11  ;;  %1435 = vmatprep.subr.bf16.mxu0 %v1434_v12  ;;  %v430_v11 = vld [vmem:[%s1663_s29 + $0x5c8] sm:$0xff]  ;;  %v1484_v12 = vpack.c.bf16 %v380_v4, %v379_v3  ;;  %v388_v56 = vld [vmem:[%s1663_s29 + $0x478] sm:$0xff]  ;;  %v1530_v57 = vpack.c.bf16 %v436_v51, %v435_v50  ;;  %v946_v33 = vld [vmem:[%s1949_s3 + $0x30] sm:$0xff] (!%p1096_p6) }
  0x56   : > { %1467 = vmatprep.subr.bf16.mxu1 %v1466_v17  ;;  %v382_v17 = vld [vmem:[%s1663_s29 + $0x448] sm:$0xff]  ;;  %v1518_v19 = vpack.c.bf16 %v430_v11, %v429_v10  ;;  %v947_v35 = vld [vmem:[%s1949_s3 + $0x38] sm:$0xff] (!%p1096_p6) }
  0x57   : > { %v945_v29 = vld [vmem:[%s1949_s3 + $0x28] sm:$0xff] (!%p1096_p6) }
  0x58   : > { %1437 = vmatpush3.bf16.msra.mxu0 %v1436_v23  ;;  %v431_v23 = vld [vmem:[%s1663_s29 + $0x5d0] sm:$0xff] }
  0x59   : > { %1469 = vmatpush3.bf16.msra.mxu1 %v1468_v25  ;;  %1471 = vmatprep.subr.bf16.mxu0 %v1470_v26  ;;  %v1488_v25 = vpack.c.bf16 %v382_v17, %v381_v16  ;;  %v1520_v26 = vpack.c.bf16 %v414_v20, %v413_v18  ;;  %v1522_v31 = vpack.c.bf16 %v432_v24, %v431_v23  ;;  %v241_v17 = vld [vmem:[#allocation2] sm:$0x3]  ;;  %v1609_v23 = vmov (!%p1096_p6), 0.0|0.0  }
  0x5a   : > { %1503 = vmatprep.subr.bf16.mxu1 %v1502_v30  ;;  %v415_v30 = vld [vmem:[%s1663_s29 + $0x550] sm:$0xff]  ;;  %v940_v20 = vld [vmem:[%s1949_s3] sm:$0xff] (!%p1096_p6) }
  0x5b   : > { %708 = vmatmul.mubr.f32.vlgmr.msra.gmra.mrb[2].mxu0 %v1773_v34  ;;  %v1508_v34 = vpack.c.bf16 %v408_v47, %v407_v42  ;;  %v386_v42 = vld [vmem:[%s1663_s29 + $0x468] sm:$0xff]  ;;  %v1535_v24 = vpack.c.bf16 (!%p1096_p6), %v941_v21, %v940_v20 }
  0x5c   : > { %1473 = vmatpush3.bf16.msra.mxu0 %v1472_v36  ;;  %778 = vmatmul.mubr.f32.vlgmr.msra.gmra.mrb[2].mxu1 %v1784_v46  ;;  %v395_v46 = vld [vmem:[%s1663_s29 + $0x4b0] sm:$0xff]  ;;  %v433_v36 = vld [vmem:[%s1663_s29 + $0x5e0] sm:$0xff]  ;;  %v418_v47 = vld [vmem:[%s1663_s29 + $0x568] sm:$0xff] }
  0x5d   : > { %1505 = vmatpush3.bf16.msra.mxu1 %v1504_v37  ;;  %1475 = vmatprep.subr.bf16.mxu0 %v1474_v39  ;;  %v1482_v2 = vpack.c.bf16 %v396_v61, %v395_v46  ;;  %v434_v37 = vld [vmem:[%s1663_s29 + $0x5e8] sm:$0xff]  ;;  %v1524_v39 = vpack.c.bf16 %v416_v32, %v415_v30  ;;  %v1541_v30 = vpack.c.bf16 (!%p1096_p6), %v945_v29, %v944_v28  ;;  %v1097_v32 = vld [vmem:[%s1948_s2] ss:$0 sm:$0xff] (!%p1096_p6) }
  0x5e   : > { %1507 = vmatprep.subr.bf16.mxu1 %v1506_v45  ;;  %847 = vmatprep.mubr.f32.mxu0 %v489_v52  ;;  %v1526_v45 = vpack.c.bf16 %v434_v37, %v433_v36  ;;  %v1496_v52 = vpack.c.bf16 %v386_v42, %v385_v41  ;;  %v1544_v37 = vpack.c.bf16 (!%p1096_p6), %v947_v35, %v946_v33 }
  0x5f   : > { %917 = vmatprep.mubr.f32.mxu1 %v490_v59  ;;  %v420_v59 = vld [vmem:[%s1663_s29 + $0x578] sm:$0xff] }
  0x60   : > { %1477 = vmatpush3.bf16.msra.mxu0 %v1476_v54  ;;  %v1528_v54 = vpack.c.bf16 %v418_v47, %v417_v44  ;;  %v1532_v60 = vpack.c.bf16 %v420_v59, %v419_v58 }
  0x61   : > { %1509 = vmatpush3.bf16.msra.mxu1 %v1508_v34  ;;  %1479 = vmatprep.subr.bf16.mxu0 %v1478_v55  ;;  %v1498_v34 = vpack.c.bf16 %v404_v49, %v403_v48  ;;  %v387_v55 = vld [vmem:[%s1663_s29 + $0x470] sm:$0xff] }
  0x62   : > { %1511 = vmatprep.subr.bf16.mxu1 %v1510_v14  ;;  %v1500_v14 = vpack.c.bf16 %v388_v56, %v387_v55 }
  0x64   : > { %1481 = vmatpush3.bf16.msra.mxu0 %v1480_v0 }
  0x65   : > { %1513 = vmatpush3.bf16.msra.mxu1 %v1512_v1  ;;  %1483 = vmatprep.subr.bf16.mxu0 %v1482_v2 }
  0x66   : > { %1515 = vmatprep.subr.bf16.mxu1 %v1514_v6 }
  0x68   : > { %1485 = vmatpush3.bf16.msra.mxu0 %v1484_v12 }
  0x69   : > { %1517 = vmatpush3.bf16.msra.mxu1 %v1516_v13  ;;  %1487 = vmatprep.subr.bf16.mxu0 %v1486_v15 }
  0x6a   : > { %1519 = vmatprep.subr.bf16.mxu1 %v1518_v19 }
  0x6c   : > { %1489 = vmatpush3.bf16.msra.mxu0 %v1488_v25  ;;  %v943_v25 = vld [vmem:[%s1949_s3 + $0x18] sm:$0xff] (!%p1096_p6) }
  0x6d   : > { %1521 = vmatpush3.bf16.msra.mxu1 %v1520_v26  ;;  %1491 = vmatprep.subr.bf16.mxu0 %v1490_v27  ;;  %v1611_v26 = vmov (!%p1096_p6), 0.0   ;;  %v1538_v27 = vpack.c.bf16 (!%p1096_p6), %v943_v25, %v942_v22 }
  0x6e   : > { %1523 = vmatprep.subr.bf16.mxu1 %v1522_v31 }
  0x70   : > { %1493 = vmatpush3.bf16.msra.mxu0 %v1492_v38 }
  0x71   : > { %1525 = vmatpush3.bf16.msra.mxu1 %v1524_v39  ;;  %1495 = vmatprep.subr.bf16.mxu0 %v1494_v40  ;;  %v1098_v39 = vld [vmem:[%s1950_s4] ss:$0 sm:$0xff] (!%p1096_p6) }
  0x72   : > { %1527 = vmatprep.subr.bf16.mxu1 %v1526_v45 }
  0x74   : > { %1497 = vmatpush3.bf16.msra.mxu0 %v1496_v52 }
  0x75   : > { %1529 = vmatpush3.bf16.msra.mxu1 %v1528_v54  ;;  %1499 = vmatprep.subr.bf16.mxu0 %v1498_v34 }
  0x76   : > { %1531 = vmatprep.subr.bf16.mxu1 %v1530_v57 }
  0x78   : > { %1501 = vmatpush3.bf16.msra.mxu0 %v1500_v14 }
  0x79   : > { %1533 = vmatpush3.bf16.msra.mxu1 %v1532_v60  ;;  %1534 = vmatprep.subr.bf16.mxu0 (!%p1096_p6), %v1609_v23 }
  0x7b   : > { %848 = vmatmul.mubr.f32.vlgmr.msra.gmra.mrb[4].mxu0 %v1827_v43 }
  0x7c   : > { %918 = vmatmul.mubr.f32.vlgmr.msra.gmra.mrb[4].mxu1 %v1838_v53  ;;  %1339 = vmatprep.mubr.msk.f32.mxu0 (!%p1096_p6), %vm1610_vm2, %v1611_v26 }
  0x7d   : > { %1536 = vmatpush3.bf16.msra.mxu0 (!%p1096_p6), %v1535_v24 }
  0x7e   : > { %1537 = vmatprep.subr.bf16.mxu0 (!%p1096_p6), %v1609_v23 }
  0x81   : > { %1539 = vmatpush3.bf16.msra.mxu0 (!%p1096_p6), %v1538_v27 }
  0x82   : > { %1540 = vmatprep.subr.bf16.mxu0 (!%p1096_p6), %v1609_v23 }
  0x85   : > { %1542 = vmatpush3.bf16.msra.mxu0 (!%p1096_p6), %v1541_v30 }
  0x86   : > { %1543 = vmatprep.subr.bf16.mxu0 (!%p1096_p6), %v1609_v23 }
  0x89   : > { %1545 = vmatpush3.bf16.msra.mxu0 (!%p1096_p6), %v1544_v37 }
 0x10e   : > { %v1136_v46 = vpop.f32.mrb[0].mxu0 }
 0x10f   : > { %v1171_v61 = vpop.f32.mrb[0].mxu1  ;;  %v1137_v62 = vpop.f32.mrb[1].mxu0 }
 0x110   : > { %v1138_v63 = vadd.f32 %v1137_v62, %v1136_v46  ;;  %v1172_v0 = vpop.f32.mrb[1].mxu1 }
 0x111   : > { %v1173_v1 = vadd.f32 %v1172_v0, %v1171_v61 }
 0x113   : > { %v640_v2 = vadd.f32 %v1173_v1, %v1138_v63 }
 0x12e   : > { %v1206_v3 = vpop.f32.mrb[2].mxu0 }
 0x12f   : > { %v1207_v4 = vpop.f32.mrb[3].mxu0  ;;  %v1241_v5 = vpop.f32.mrb[2].mxu1 }
 0x130   : > { %v1208_v6 = vadd.f32 %v1207_v4, %v1206_v3  ;;  %v1242_v7 = vpop.f32.mrb[3].mxu1 }
 0x131   : > { %v1243_v8 = vadd.f32 %v1242_v7, %v1241_v5 }
 0x132   : > { %v710_v9 = vadd.f32 %v1208_v6, %v640_v2 }
 0x134   : > { %v780_v10 = vadd.f32 %v1243_v8, %v710_v9 }
 0x14e   : > { %v1276_v11 = vpop.f32.mrb[4].mxu0 }
 0x14f   : > { %v1277_v12 = vpop.f32.mrb[5].mxu0  ;;  %v1311_v43 = vpop.f32.mrb[4].mxu1 }
 0x150   : > { %v1278_v13 = vadd.f32 %v1277_v12, %v1276_v11  ;;  %v1312_v53 = vpop.f32.mrb[5].mxu1 }
 0x151   : > { %v1313_v15 = vadd.f32 %v1312_v53, %v1311_v43 }
 0x152   : > { %v850_v16 = vadd.f32 %v1278_v13, %v780_v10  ;;  %929 = sbr.rel (%p1096_p6) target bundleno = 571 (0x23b), region = 48 }
 0x154   : > { %v920_v18 = vadd.f32 %v1313_v15, %v850_v16 }
 0x156   : > { %v923_v19 = vadd.f32 %v920_v18, %v241_v17 }
 0x158   : > { %925 = vst.msk [vmem:[#allocation2] sm:$0x3] %vm924_vm1, %v923_v19 }
 0x15f   : > { %v930_v31 = vld [vmem:[#allocation2] sm:$0x3] }
 0x160   : > { %v938_v36 = vadd.f32 %v1097_v32, %v930_v31 }
 0x162   : > { %v939_v38 = vmax.f32 %v938_v36, 0.0 }
 0x164   : > { %1340 = vmatmul.mubr.msk.f32.vlgmr.msra.gmra.mrb[0].mxu0 %vm955_vm3, %v939_v38 }
 0x237   : > { %v1025_v40 = vpop.f32.mrb[0].mxu0 }
 0x238   : > { %v1026_v41 = vadd.f32 %v1098_v39, %v1025_v40  ;;  %v1341_v42 = vpop.f32.mrb[1].mxu0 }
 0x23a   : > { %1030 = vst.msk [vmem:[#allocation3] sm:$0x3] %vm1029_vm4, %v1026_v41 }
 0x23b PF: > { %p1550_p7 = scmp.eq.s32.totalorder %s1649_s19, 3  ;;  %s1612_s27 = smov [#allocation3]  }
 0x23c   : > { %s1038_s28 = sshll.u32 %s1612_s27, 4  ;;  %s1039_s28 = int_to_ptr.vmem [resolvable:$true] %s1038_s28 }
 0x23d   : > { %s1569_s29 = scalar_lea.vmem %s1039_s28, 32  ;;  %p1576_p11 = scmp.lt.s32.totalorder %s1039_s28, %s1039_s28 }
 0x23e   : > { %p1570_p8 = scmp.ne.s32.totalorder %s1039_s28, %s1569_s29  ;;  %p1577_p12 = scmp.lt.s32.totalorder %s1569_s29, %s1569_s29 }
 0x240   : > { %p1571_p9 = pnand %p1570_p8, %p1550_p7  ;;  %p1578_p13 = por %p1577_p12, %p1576_p11 }
 0x242   : > { %p1572_p10 = pneg %p1571_p9 }
 0x244   : > { %p1579_p0 = pnand %p1578_p13, %p1572_p10 }
 0x246   : > { %1582 = shalt.err (!%p1579_p0)
}
 0x247   : > { %s1583_s7 = scalar_lea.hbm %s1951_s5, 32 }
 0x248   : > { %p1584_p1 = scmp.ne.s32.totalorder %s1951_s5, %s1583_s7  ;;  %p1589_p4 = scmp.lt.u32.totalorder %s1583_s7, %s1951_s5 }
 0x24a   : > { %p1585_p2 = pnand %p1584_p1, %p1550_p7 }
 0x24c   : > { %p1586_p3 = pneg %p1585_p2 }
 0x24e   : > { %p1591_p5 = pnand %p1589_p4, %p1586_p3 }
 0x250   : > { %1594 = shalt.err (!%p1591_p5)
}
 0x251   : > { %1547 = dma.vmem_to_hbm [thread:$0]  (%p1550_p7), %s1039_s28, 32, %s1951_s5, [#allocation4]  }
 0x252   : > { %1600 = dma.done.wait (%p1550_p7), [#allocation4], 32  }
 0x253   : > { %1602 = vsyncadd (%p1550_p7), [#allocation4], 4294967264 }
 0x254 PF: > { %s16_s18 = sadd.s32 1, %s1605_s18  }
 0x255   : > { %p13_p6 = scmp.ge.s32.totalorder %s16_s18, 6  }
 0x257   :  { %15 = sbr.rel (!%p13_p6) target bundleno = 1 (0x1), region = 78 }
 0x25e   :  { %1051 = vsyncpa [#allocation4], 1 }
 0x25f   :  { %1053 = vsyncpa [#allocation4 + $0x1], 1 }

</bundles_post_ra>
